<compile_context>
chip_gen: v5e
topology: v5e:2x2
jax: 0.10.0
libtpu: 0.0.40
codegen_flags: <defaults>
</compile_context>

<pallas_src>
import math

import numpy as np
import jax
import jax.numpy as jnp
from jax.experimental import pallas as pl
from jax.experimental.pallas import tpu as pltpu

# MXU operand dtype; accumulation is always f32 (preferred_element_type).
# Set to jnp.float32 for strict f32 reproduction of the PyTorch reference.
MATMUL_DTYPE = jnp.bfloat16


def _mxu(a):
    return a.astype(MATMUL_DTYPE)


def _round_up(n, m):
    return ((n + m - 1) // m) * m


# ----------------------------------------------------------------------------
# Row-tiled fused Linear (+ optional tanh)
# ----------------------------------------------------------------------------
def _make_linear_kernel(activation):
    def kernel(x_ref, w_ref, b_ref, o_ref):
        y = jnp.dot(_mxu(x_ref[...]), _mxu(w_ref[...]),
                    preferred_element_type=jnp.float32) + b_ref[...]
        if activation == "tanh":
            y = jnp.tanh(y)
        o_ref[...] = y
    return kernel


def linear_pallas(x, w, b, activation=None, tile_n=512):
    """act(x @ w + b).  x:(N,K) f32, w:(K,M), b:(1,M) -> (N,M) f32."""
    # TODO(synk): tile_n could be raised to 1024 on v5e/v6e (128 MiB VMEM) and
    # kept at 512 on v7x (64 MiB); left at one value for simplicity.
    N, K = x.shape
    M = w.shape[1]
    tn = _round_up(N, 8) if N <= tile_n else tile_n
    Np = _round_up(N, tn)
    if Np != N:
        x = jnp.pad(x, ((0, Np - N), (0, 0)))
    out = pl.pallas_call(
        _make_linear_kernel(activation),
        out_shape=jax.ShapeDtypeStruct((Np, M), jnp.float32),
        grid=(Np // tn,),
        in_specs=[pl.BlockSpec((tn, K), lambda i: (i, 0)),
                  pl.BlockSpec((K, M), lambda i: (0, 0)),
                  pl.BlockSpec((1, M), lambda i: (0, 0))],
        out_specs=pl.BlockSpec((tn, M), lambda i: (i, 0)),
        compiler_params=pltpu.CompilerParams(
            dimension_semantics=("parallel",)),
    )(x, w, b)
    return out[:N] if Np != N else out


# ----------------------------------------------------------------------------
# LSTM input projection: one row-tiled kernel emitting BOTH direction gate
# streams (two lane-dense outputs; x is read from HBM exactly once).
# ----------------------------------------------------------------------------
def _gates_proj_kernel(x_ref, wf_ref, bf_ref, wb_ref, bb_ref, of_ref, ob_ref):
    x = _mxu(x_ref[...])
    of_ref[...] = jnp.dot(x, _mxu(wf_ref[...]),
                          preferred_element_type=jnp.float32) + bf_ref[...]
    ob_ref[...] = jnp.dot(x, _mxu(wb_ref[...]),
                          preferred_element_type=jnp.float32) + bb_ref[...]


def lstm_input_proj(x_flat, wih_f, b_f, wih_b, b_b, tile_n=512):
    """x:(N,F) -> (gx_f:(N,4H), gx_b:(N,4H))."""
    N, F = x_flat.shape
    G = wih_f.shape[1]
    tn = _round_up(N, 8) if N <= tile_n else tile_n
    Np = _round_up(N, tn)
    if Np != N:
        x_flat = jnp.pad(x_flat, ((0, Np - N), (0, 0)))
    gf, gb = pl.pallas_call(
        _gates_proj_kernel,
        out_shape=(jax.ShapeDtypeStruct((Np, G), jnp.float32),
                   jax.ShapeDtypeStruct((Np, G), jnp.float32)),
        grid=(Np // tn,),
        in_specs=[pl.BlockSpec((tn, F), lambda i: (i, 0)),
                  pl.BlockSpec((F, G), lambda i: (0, 0)),
                  pl.BlockSpec((1, G), lambda i: (0, 0)),
                  pl.BlockSpec((F, G), lambda i: (0, 0)),
                  pl.BlockSpec((1, G), lambda i: (0, 0))],
        out_specs=(pl.BlockSpec((tn, G), lambda i: (i, 0)),
                   pl.BlockSpec((tn, G), lambda i: (i, 0))),
        compiler_params=pltpu.CompilerParams(
            dimension_semantics=("parallel",)),
    )(x_flat, wih_f, b_f, wih_b, b_b)
    if Np != N:
        gf, gb = gf[:N], gb[:N]
    return gf, gb


# ----------------------------------------------------------------------------
# Fused bidirectional LSTM recurrence, batch-tiled.
# PyTorch gate order i, f, g, o; input projection precomputed outside.
# Writes a single (S, tb, 2H) output: fwd -> lanes [:H], bwd -> lanes [H:].
# ----------------------------------------------------------------------------
def _make_bilstm_recurrence_kernel(S, TB, H):
    def kernel(gxf_ref, gxb_ref, whh_f_ref, whh_b_ref, out_ref):
        # Hoist the recurrent-weight casts out of the loop.
        whh_f = _mxu(whh_f_ref[...])
        whh_b = _mxu(whh_b_ref[...])

        def gate_apply(gates, c):
            # TODO(synk): gate slices land at H-lane offsets; only free when
            # H % 128 == 0 (e.g. H=384).  A 128-padded gate layout would avoid
            # the lane shuffles for small H at the cost of wasted lanes.
            i = jax.nn.sigmoid(gates[:, 0 * H:1 * H])
            f = jax.nn.sigmoid(gates[:, 1 * H:2 * H])
            g = jnp.tanh(gates[:, 2 * H:3 * H])
            o = jax.nn.sigmoid(gates[:, 3 * H:4 * H])
            c_new = f * c + i * g
            h_new = o * jnp.tanh(c_new)
            return h_new, c_new

        def step(t, carry):
            h_f, c_f, h_b, c_b = carry
            tr = S - 1 - t
            gates_f = gxf_ref[t] + jnp.dot(
                _mxu(h_f), whh_f, preferred_element_type=jnp.float32)
            gates_b = gxb_ref[tr] + jnp.dot(
                _mxu(h_b), whh_b, preferred_element_type=jnp.float32)
            h_f, c_f = gate_apply(gates_f, c_f)
            h_b, c_b = gate_apply(gates_b, c_b)
            out_ref[t, :, 0:H] = h_f
            out_ref[tr, :, H:2 * H] = h_b
            return h_f, c_f, h_b, c_b

        z = jnp.zeros((TB, H), jnp.float32)
        jax.lax.fori_loop(0, S, step, (z, z, z, z), unroll=(S <= 32))
    return kernel


def bilstm_tm(x_sbf, p, tile_b=8):
    """Single-layer bidirectional LSTM, time-major in/out: (S,B,F)->(S,B,2H)."""
    S, B, F = x_sbf.shape
    H = p["whh_f"].shape[0]

    # One MXU pass for the input projections of BOTH directions.
    gf, gb = lstm_input_proj(x_sbf.reshape(S * B, F),
                             p["wih_f"], p["b_f"], p["wih_b"], p["b_b"])
    gx_f = gf.reshape(S, B, 4 * H)
    gx_b = gb.reshape(S, B, 4 * H)

    # Batch tiling: each grid step runs the full S-recurrence for a batch slice.
    tb = B if B <= tile_b else tile_b
    Bp = _round_up(B, tb)
    if Bp != B:
        pad = ((0, 0), (0, Bp - B), (0, 0))
        gx_f = jnp.pad(gx_f, pad)
        gx_b = jnp.pad(gx_b, pad)

    # TODO(synk): for very long S, additionally chunk the time axis (carries in
    # VMEM scratch across an 'arbitrary' grid axis) to bound VMEM residency.
    out = pl.pallas_call(
        _make_bilstm_recurrence_kernel(S, tb, H),
        out_shape=jax.ShapeDtypeStruct((S, Bp, 2 * H), jnp.float32),
        grid=(Bp // tb,),
        in_specs=[pl.BlockSpec((S, tb, 4 * H), lambda i: (0, i, 0)),
                  pl.BlockSpec((S, tb, 4 * H), lambda i: (0, i, 0)),
                  pl.BlockSpec((H, 4 * H), lambda i: (0, 0)),
                  pl.BlockSpec((H, 4 * H), lambda i: (0, 0))],
        out_specs=pl.BlockSpec((S, tb, 2 * H), lambda i: (0, i, 0)),
        compiler_params=pltpu.CompilerParams(
            dimension_semantics=("parallel",)),
    )(gx_f, gx_b, p["whh_f"], p["whh_b"])
    return out[:, :B] if Bp != B else out                         # (S, B, 2H)


# ----------------------------------------------------------------------------
# Fused handshaking heads kernel:
#   in-kernel pair gather (one-hot MXU matmul) + tanh combine + dist add +
#   ONE fused ent/head/tail matmul.  Grid = (B, P_tiles); the per-batch (S,H)
#   top/bot blocks stay resident across the P-tile axis.
# ----------------------------------------------------------------------------
def _make_heads_kernel(use_dist, add_ent, add_rel, n_ent):
    def kernel(*refs):
        if use_dist:
            oi_ref, oj_ref, top_ref, bot_ref, dist_ref, w_ref, b_ref, out_ref = refs
        else:
            oi_ref, oj_ref, top_ref, bot_ref, w_ref, b_ref, out_ref = refs

        # Gather pair rows via one-hot matmuls (combine bias is folded into the
        # 'top' per-token projection, so it rides along with the gather).
        g_i = jnp.dot(oi_ref[...], _mxu(top_ref[0]),
                      preferred_element_type=jnp.float32)
        g_j = jnp.dot(oj_ref[...], _mxu(bot_ref[0]),
                      preferred_element_type=jnp.float32)
        y = jnp.tanh(g_i + g_j)

        w = _mxu(w_ref[...])
        b = b_ref[...]
        if not use_dist:
            out_ref[0] = jnp.dot(_mxu(y), w,
                                 preferred_element_type=jnp.float32) + b
        elif add_ent and add_rel:
            h = y + dist_ref[...]
            out_ref[0] = jnp.dot(_mxu(h), w,
                                 preferred_element_type=jnp.float32) + b
        else:
            # Exactly one of the two heads adds the distance embedding.
            d = dist_ref[...]
            h_ent = y + d if add_ent else y
            h_rel = y + d if add_rel else y
            ent = jnp.dot(_mxu(h_ent), w[:, :n_ent],
                          preferred_element_type=jnp.float32) + b[:, :n_ent]
            rel = jnp.dot(_mxu(h_rel), w[:, n_ent:],
                          preferred_element_type=jnp.float32) + b[:, n_ent:]
            out_ref[0] = jnp.concatenate([ent, rel], axis=-1)
    return kernel


def fused_heads_pallas(oh_i, oh_j, top, bot, dist, w_all, b_all,
                       add_ent, add_rel, tile_p=512):
    """oh_i/oh_j:(P,S) MATMUL_DTYPE one-hot, top/bot:(B,S,H) f32,
    dist:(P,H) f32 or None, w_all:(H,M), b_all:(1,M) -> (B,P,M) f32."""
    B, S, H = top.shape
    P = oh_i.shape[0]
    M = w_all.shape[1]
    use_dist = (dist is not None) and (add_ent or add_rel)

    tp = _round_up(P, 8) if P <= tile_p else tile_p
    Pp = _round_up(P, tp)
    if Pp != P:
        pad = ((0, Pp - P), (0, 0))
        oh_i = jnp.pad(oh_i, pad)
        oh_j = jnp.pad(oh_j, pad)
        if use_dist:
            dist = jnp.pad(dist, pad)
    n_pt = Pp // tp

    in_specs = [pl.BlockSpec((tp, S), lambda b, j: (j, 0)),
                pl.BlockSpec((tp, S), lambda b, j: (j, 0)),
                pl.BlockSpec((1, S, H), lambda b, j: (b, 0, 0)),
                pl.BlockSpec((1, S, H), lambda b, j: (b, 0, 0))]
    args = [oh_i, oh_j, top, bot]
    if use_dist:
        in_specs.append(pl.BlockSpec((tp, H), lambda b, j: (j, 0)))
        args.append(dist)
    in_specs += [pl.BlockSpec((H, M), lambda b, j: (0, 0)),
                 pl.BlockSpec((1, M), lambda b, j: (0, 0))]
    args += [w_all, b_all]

    out = pl.pallas_call(
        _make_heads_kernel(use_dist, add_ent, add_rel, n_ent=2),
        out_shape=jax.ShapeDtypeStruct((B, Pp, M), jnp.float32),
        grid=(B, n_pt),
        in_specs=in_specs,
        out_specs=pl.BlockSpec((1, tp, M), lambda b, j: (b, j, 0)),
        compiler_params=pltpu.CompilerParams(
            dimension_semantics=("parallel", "parallel")),
    )(*args)
    return out[:, :P] if Pp != P else out


# ----------------------------------------------------------------------------
# Distance embeddings (same formula as the PyTorch module)
# ----------------------------------------------------------------------------
def make_dist_embeddings(dist_emb_size, hidden_size, seq_len):
    d = np.arange(dist_emb_size, dtype=np.float64)[:, None]
    i = np.arange(hidden_size, dtype=np.float64)[None, :]
    even = np.sin(d / np.power(10000.0, i / hidden_size))
    odd = np.cos(d / np.power(10000.0, (i - 1.0) / hidden_size))
    dist_emb = np.where((np.arange(hidden_size)[None, :] % 2) == 0, even, odd)
    segs = [dist_emb[:after_num, :] for after_num in range(seq_len, 0, -1)]
    return jnp.asarray(np.concatenate(segs, axis=0), dtype=jnp.float32)


# ----------------------------------------------------------------------------
# Parameter init (deterministic, synthetic)
# ----------------------------------------------------------------------------
def init_params(key, vocab, emb_dim, enc_hidden, dec_hidden, rel_size,
                seq_len, dist_emb_size):
    ks = list(jax.random.split(key, 16))

    def u(k, shape, scale):
        return jax.random.uniform(k, shape, jnp.float32, -scale, scale)

    H1 = enc_hidden // 2
    H2 = dec_hidden // 2
    p = {}
    p["word_emb"] = jax.random.normal(ks[0], (vocab, emb_dim), jnp.float32) * 0.1

    def lstm_params(k, in_dim, hid):
        kk = jax.random.split(k, 6)
        s = 1.0 / math.sqrt(hid)
        return {
            "wih_f": u(kk[0], (in_dim, 4 * hid), s),
            "whh_f": u(kk[1], (hid, 4 * hid), s),
            "b_f":   u(kk[2], (1, 4 * hid), s),       # b_ih + b_hh folded
            "wih_b": u(kk[3], (in_dim, 4 * hid), s),
            "whh_b": u(kk[4], (hid, 4 * hid), s),
            "b_b":   u(kk[5], (1, 4 * hid), s),
        }

    p["enc_lstm"] = lstm_params(ks[1], emb_dim, H1)
    p["dec_lstm"] = lstm_params(ks[2], enc_hidden, H2)

    hidden = dec_hidden
    s = 1.0 / math.sqrt(2 * hidden)
    p["combine_w"] = u(ks[3], (2 * hidden, hidden), s)   # shaking_type == 'cat'
    p["combine_b"] = u(ks[4], (1, hidden), s)
    s = 1.0 / math.sqrt(hidden)
    p["ent_w"] = u(ks[5], (hidden, 2), s)
    p["ent_b"] = u(ks[6], (1, 2), s)
    p["head_w"] = u(ks[7], (hidden, 3 * rel_size), s)    # rel_size Linears(H,3) stacked
    p["head_b"] = u(ks[8], (1, 3 * rel_size), s)
    p["tail_w"] = u(ks[9], (hidden, 3 * rel_size), s)
    p["tail_b"] = u(ks[10], (1, 3 * rel_size), s)

    # Upper-triangular pair indices as one-hot matrices (bf16 exact for 0/1);
    # used for the in-kernel MXU gather of handshaking pairs.
    idx_i = np.array([i for i in range(seq_len) for j in range(i, seq_len)],
                     dtype=np.int32)
    idx_j = np.array([j for i in range(seq_len) for j in range(i, seq_len)],
                     dtype=np.int32)
    P = idx_i.shape[0]
    oh_i = np.zeros((P, seq_len), np.float32)
    oh_j = np.zeros((P, seq_len), np.float32)
    oh_i[np.arange(P), idx_i] = 1.0
    oh_j[np.arange(P), idx_j] = 1.0
    p["pair_onehot_i"] = jnp.asarray(oh_i, dtype=MATMUL_DTYPE)
    p["pair_onehot_j"] = jnp.asarray(oh_j, dtype=MATMUL_DTYPE)

    if dist_emb_size != -1:
        p["dist_embeddings"] = make_dist_embeddings(dist_emb_size, hidden, seq_len)
    return p


# ----------------------------------------------------------------------------
# Full forward (mirrors TPLinkerBiLSTM.forward, shaking_type='cat', eval mode)
# ----------------------------------------------------------------------------
def tplinker_forward(params, input_ids, cfg):
    B, S = input_ids.shape
    # Embedding gather kept in plain JAX glue (data-dependent gather); produce
    # the embedding directly in time-major (S, B, E) layout.
    emb_sbe = jnp.take(params["word_emb"], input_ids.T, axis=0)      # (S, B, E)
    # emb_dropout / rnn_dropout are identity at inference.
    enc = bilstm_tm(emb_sbe, params["enc_lstm"])                     # (S, B, enc_hidden)
    dec = bilstm_tm(enc, params["dec_lstm"])                         # (S, B, dec_hidden)
    H = dec.shape[-1]
    # Single layout conversion of the large activations.
    dec_bsh = jnp.transpose(dec, (1, 0, 2))                          # (B, S, H)

    # HandshakingKernel, shaking_type == 'cat':
    #   tanh(cat(h_i, h_j) @ W + b) == tanh(h_i @ W_top + h_j @ W_bot + b)
    # -> project ONCE per token; the per-pair gather happens inside the heads
    #    kernel (one-hot MXU gather), so no (B, P, H) tensor hits HBM.
    # TODO(synk): only shaking_type='cat' implemented; 'cln'/'cat_plus' variants
    # (conditional LayerNorm / inner-context pooling/LSTM) are not emitted here.
    w_proj = jnp.concatenate([params["combine_w"][:H], params["combine_w"][H:]],
                             axis=1)                                  # (H, 2H)
    b_proj = jnp.concatenate([params["combine_b"],
                              jnp.zeros_like(params["combine_b"])], axis=1)
    proj = linear_pallas(dec_bsh.reshape(B * S, H), w_proj, b_proj)   # (B*S, 2H)
    proj = proj.reshape(B, S, 2 * H)
    top, bot = proj[:, :, :H], proj[:, :, H:]                         # (B, S, H)

    R = cfg["rel_size"]
    # Fuse ent + head + tail FCs into a single (H, 2+6R) matmul.
    w_all = jnp.concatenate([params["ent_w"], params["head_w"], params["tail_w"]],
                            axis=1)                                   # (H, 2+6R)
    b_all = jnp.concatenate([params["ent_b"], params["head_b"], params["tail_b"]],
                            axis=1)                                   # (1, 2+6R)

    dist = params["dist_embeddings"] if cfg["dist_emb_size"] != -1 else None
    add_ent = (cfg["dist_emb_size"] != -1) and cfg["ent_add_dist"]
    add_rel = (cfg["dist_emb_size"] != -1) and cfg["rel_add_dist"]

    out = fused_heads_pallas(params["pair_onehot_i"], params["pair_onehot_j"],
                             top, bot, dist, w_all, b_all, add_ent, add_rel)
    P = out.shape[1]
    ent_out = out[..., :2]                                            # (B, P, 2)
    head_out = out[..., 2:2 + 3 * R].reshape(B, P, R, 3).transpose(0, 2, 1, 3)
    tail_out = out[..., 2 + 3 * R:].reshape(B, P, R, 3).transpose(0, 2, 1, 3)
    return ent_out, head_out, tail_out


# ----------------------------------------------------------------------------
if __name__ == "__main__":
    B, S = 2, 8
    vocab, emb_dim = 50, 32
    enc_hidden, dec_hidden = 32, 32
    rel_size = 3
    dist_emb_size = S
    cfg = dict(rel_size=rel_size, dist_emb_size=dist_emb_size,
               ent_add_dist=True, rel_add_dist=True)

    key = jax.random.PRNGKey(0)
    kp, kx = jax.random.split(key)
    params = init_params(kp, vocab, emb_dim, enc_hidden, dec_hidden,
                         rel_size, S, dist_emb_size)
    input_ids = jax.random.randint(kx, (B, S), 0, vocab, dtype=jnp.int32)

    fwd = jax.jit(lambda p, ids: tplinker_forward(p, ids, cfg))
    ent, head, tail = fwd(params, input_ids)
    jax.block_until_ready((ent, head, tail))

    P = S * (S + 1) // 2
    assert ent.shape == (B, P, 2)
    assert head.shape == (B, rel_size, P, 3)
    assert tail.shape == (B, rel_size, P, 3)
    assert bool(jnp.all(jnp.isfinite(ent)))
    assert bool(jnp.all(jnp.isfinite(head)))
    assert bool(jnp.all(jnp.isfinite(tail)))
    print("KERNEL_OK")
</pallas_src>

<mosaic_0001>
module attributes {stable_mosaic.version = 11 : i64} {
  func.func @_gates_proj_kernel(%arg0: i32, %arg1: memref<16x32xf32, #tpu.memory_space<vmem>>, %arg2: memref<32x64xf32, #tpu.memory_space<vmem>>, %arg3: memref<1x64xf32, #tpu.memory_space<vmem>>, %arg4: memref<32x64xf32, #tpu.memory_space<vmem>>, %arg5: memref<1x64xf32, #tpu.memory_space<vmem>>, %arg6: memref<16x64xf32, #tpu.memory_space<vmem>>, %arg7: memref<16x64xf32, #tpu.memory_space<vmem>>) attributes {dimension_semantics = [#tpu.dimension_semantics<parallel>], iteration_bounds = array<i64: 1>, scalar_prefetch = 0 : i64, scratch_operands = 0 : i64, tpu.core_type = #tpu.core_type<tc>, window_params = [{transform_indices = @transform_0, window_bounds = array<i64: 16, 32>}, {pipeline_mode = #tpu.pipeline_mode<synchronous>, transform_indices = @transform_1, window_bounds = array<i64: 32, 64>}, {pipeline_mode = #tpu.pipeline_mode<synchronous>, transform_indices = @transform_2, window_bounds = array<i64: 1, 64>}, {pipeline_mode = #tpu.pipeline_mode<synchronous>, transform_indices = @transform_3, window_bounds = array<i64: 32, 64>}, {pipeline_mode = #tpu.pipeline_mode<synchronous>, transform_indices = @transform_4, window_bounds = array<i64: 1, 64>}, {transform_indices = @transform_5, window_bounds = array<i64: 16, 64>}, {transform_indices = @transform_6, window_bounds = array<i64: 16, 64>}]} {
    %c0 = arith.constant 0 : index
    %c0_0 = arith.constant 0 : index
    %0 = vector.load %arg1[%c0, %c0_0] : memref<16x32xf32, #tpu.memory_space<vmem>>, vector<16x32xf32>
    %1 = arith.truncf %0 : vector<16x32xf32> to vector<16x32xbf16>
    %c0_1 = arith.constant 0 : index
    %c0_2 = arith.constant 0 : index
    %2 = vector.load %arg2[%c0_1, %c0_2] : memref<32x64xf32, #tpu.memory_space<vmem>>, vector<32x64xf32>
    %3 = arith.truncf %2 : vector<32x64xf32> to vector<32x64xbf16>
    %cst = arith.constant dense<0.000000e+00> : vector<16x64xf32>
    %4 = tpu.matmul %1, %3, %cst {dimension_numbers = #tpu.dot_dimension_numbers<[1], [0], [0], [1], [0, 0, 1, 1], [], []>} : vector<16x32xbf16>, vector<32x64xbf16>, vector<16x64xf32> -> vector<16x64xf32>
    %c0_3 = arith.constant 0 : index
    %c0_4 = arith.constant 0 : index
    %5 = vector.load %arg3[%c0_3, %c0_4] : memref<1x64xf32, #tpu.memory_space<vmem>>, vector<1x64xf32>
    %6 = vector.broadcast %5 : vector<1x64xf32> to vector<16x64xf32>
    %7 = arith.addf %4, %6 : vector<16x64xf32>
    %c0_5 = arith.constant 0 : index
    %c0_6 = arith.constant 0 : index
    %8 = vector.load %arg6[%c0_5, %c0_6] : memref<16x64xf32, #tpu.memory_space<vmem>>, vector<16x64xf32>
    tpu.vector_store %arg6[%c0_5, %c0_6], %7 {strides = array<i32>} : memref<16x64xf32, #tpu.memory_space<vmem>>, vector<16x64xf32>,
    %c0_7 = arith.constant 0 : index
    %c0_8 = arith.constant 0 : index
    %9 = vector.load %arg4[%c0_7, %c0_8] : memref<32x64xf32, #tpu.memory_space<vmem>>, vector<32x64xf32>
    %10 = arith.truncf %9 : vector<32x64xf32> to vector<32x64xbf16>
    %cst_9 = arith.constant dense<0.000000e+00> : vector<16x64xf32>
    %11 = tpu.matmul %1, %10, %cst_9 {dimension_numbers = #tpu.dot_dimension_numbers<[1], [0], [0], [1], [0, 0, 1, 1], [], []>} : vector<16x32xbf16>, vector<32x64xbf16>, vector<16x64xf32> -> vector<16x64xf32>
    %c0_10 = arith.constant 0 : index
    %c0_11 = arith.constant 0 : index
    %12 = vector.load %arg5[%c0_10, %c0_11] : memref<1x64xf32, #tpu.memory_space<vmem>>, vector<1x64xf32>
    %13 = vector.broadcast %12 : vector<1x64xf32> to vector<16x64xf32>
    %14 = arith.addf %11, %13 : vector<16x64xf32>
    %c0_12 = arith.constant 0 : index
    %c0_13 = arith.constant 0 : index
    %15 = vector.load %arg7[%c0_12, %c0_13] : memref<16x64xf32, #tpu.memory_space<vmem>>, vector<16x64xf32>
    tpu.vector_store %arg7[%c0_12, %c0_13], %14 {strides = array<i32>} : memref<16x64xf32, #tpu.memory_space<vmem>>, vector<16x64xf32>,
    return
  }
  func.func @transform_0(%arg0: i32) -> (i32, i32) {
    %c0_i32 = arith.constant 0 : i32
    %c0_i32_0 = arith.constant 0 : i32
    return %arg0, %c0_i32 : i32, i32
  }
  func.func @transform_1(%arg0: i32) -> (i32, i32) {
    %c0_i32 = arith.constant 0 : i32
    %c0_i32_0 = arith.constant 0 : i32
    %c0_i32_1 = arith.constant 0 : i32
    return %c0_i32, %c0_i32_0 : i32, i32
  }
  func.func @transform_2(%arg0: i32) -> (i32, i32) {
    %c0_i32 = arith.constant 0 : i32
    %c0_i32_0 = arith.constant 0 : i32
    %c0_i32_1 = arith.constant 0 : i32
    return %c0_i32, %c0_i32_0 : i32, i32
  }
  func.func @transform_3(%arg0: i32) -> (i32, i32) {
    %c0_i32 = arith.constant 0 : i32
    %c0_i32_0 = arith.constant 0 : i32
    %c0_i32_1 = arith.constant 0 : i32
    return %c0_i32, %c0_i32_0 : i32, i32
  }
  func.func @transform_4(%arg0: i32) -> (i32, i32) {
    %c0_i32 = arith.constant 0 : i32
    %c0_i32_0 = arith.constant 0 : i32
    %c0_i32_1 = arith.constant 0 : i32
    return %c0_i32, %c0_i32_0 : i32, i32
  }
  func.func @transform_5(%arg0: i32) -> (i32, i32) {
    %c0_i32 = arith.constant 0 : i32
    %c0_i32_0 = arith.constant 0 : i32
    return %arg0, %c0_i32 : i32, i32
  }
  func.func @transform_6(%arg0: i32) -> (i32, i32) {
    %c0_i32 = arith.constant 0 : i32
    %c0_i32_0 = arith.constant 0 : i32
    return %arg0, %c0_i32 : i32, i32
  }
}

module attributes {stable_mosaic.version = 11 : i64} {
  func.func @kernel(%arg0: i32, %arg1: memref<16x32xf32, #tpu.memory_space<vmem>>, %arg2: memref<32x64xf32, #tpu.memory_space<vmem>>, %arg3: memref<1x64xf32, #tpu.memory_space<vmem>>, %arg4: memref<16x64xf32, #tpu.memory_space<vmem>>) attributes {dimension_semantics = [#tpu.dimension_semantics<parallel>], iteration_bounds = array<i64: 1>, scalar_prefetch = 0 : i64, scratch_operands = 0 : i64, tpu.core_type = #tpu.core_type<tc>, window_params = [{transform_indices = @transform_0, window_bounds = array<i64: 16, 32>}, {pipeline_mode = #tpu.pipeline_mode<synchronous>, transform_indices = @transform_1, window_bounds = array<i64: 32, 64>}, {pipeline_mode = #tpu.pipeline_mode<synchronous>, transform_indices = @transform_2, window_bounds = array<i64: 1, 64>}, {transform_indices = @transform_3, window_bounds = array<i64: 16, 64>}]} {
    %c0 = arith.constant 0 : index
    %c0_0 = arith.constant 0 : index
    %0 = vector.load %arg1[%c0, %c0_0] : memref<16x32xf32, #tpu.memory_space<vmem>>, vector<16x32xf32>
    %1 = arith.truncf %0 : vector<16x32xf32> to vector<16x32xbf16>
    %c0_1 = arith.constant 0 : index
    %c0_2 = arith.constant 0 : index
    %2 = vector.load %arg2[%c0_1, %c0_2] : memref<32x64xf32, #tpu.memory_space<vmem>>, vector<32x64xf32>
    %3 = arith.truncf %2 : vector<32x64xf32> to vector<32x64xbf16>
    %cst = arith.constant dense<0.000000e+00> : vector<16x64xf32>
    %4 = tpu.matmul %1, %3, %cst {dimension_numbers = #tpu.dot_dimension_numbers<[1], [0], [0], [1], [0, 0, 1, 1], [], []>} : vector<16x32xbf16>, vector<32x64xbf16>, vector<16x64xf32> -> vector<16x64xf32>
    %c0_3 = arith.constant 0 : index
    %c0_4 = arith.constant 0 : index
    %5 = vector.load %arg3[%c0_3, %c0_4] : memref<1x64xf32, #tpu.memory_space<vmem>>, vector<1x64xf32>
    %6 = vector.broadcast %5 : vector<1x64xf32> to vector<16x64xf32>
    %7 = arith.addf %4, %6 : vector<16x64xf32>
    %c0_5 = arith.constant 0 : index
    %c0_6 = arith.constant 0 : index
    %8 = vector.load %arg4[%c0_5, %c0_6] : memref<16x64xf32, #tpu.memory_space<vmem>>, vector<16x64xf32>
    tpu.vector_store %arg4[%c0_5, %c0_6], %7 {strides = array<i32>} : memref<16x64xf32, #tpu.memory_space<vmem>>, vector<16x64xf32>,
    return
  }
  func.func @transform_0(%arg0: i32) -> (i32, i32) {
    %c0_i32 = arith.constant 0 : i32
    %c0_i32_0 = arith.constant 0 : i32
    return %arg0, %c0_i32 : i32, i32
  }
  func.func @transform_1(%arg0: i32) -> (i32, i32) {
    %c0_i32 = arith.constant 0 : i32
    %c0_i32_0 = arith.constant 0 : i32
    %c0_i32_1 = arith.constant 0 : i32
    return %c0_i32, %c0_i32_0 : i32, i32
  }
  func.func @transform_2(%arg0: i32) -> (i32, i32) {
    %c0_i32 = arith.constant 0 : i32
    %c0_i32_0 = arith.constant 0 : i32
    %c0_i32_1 = arith.constant 0 : i32
    return %c0_i32, %c0_i32_0 : i32, i32
  }
  func.func @transform_3(%arg0: i32) -> (i32, i32) {
    %c0_i32 = arith.constant 0 : i32
    %c0_i32_0 = arith.constant 0 : i32
    return %arg0, %c0_i32 : i32, i32
  }
}

module attributes {stable_mosaic.version = 11 : i64} {
  func.func @kernel(%arg0: i32, %arg1: memref<8x2x64xf32, #tpu.memory_space<vmem>>, %arg2: memref<8x2x64xf32, #tpu.memory_space<vmem>>, %arg3: memref<16x64xf32, #tpu.memory_space<vmem>>, %arg4: memref<16x64xf32, #tpu.memory_space<vmem>>, %arg5: memref<8x2x32xf32, #tpu.memory_space<vmem>>) attributes {dimension_semantics = [#tpu.dimension_semantics<parallel>], iteration_bounds = array<i64: 1>, scalar_prefetch = 0 : i64, scratch_operands = 0 : i64, tpu.core_type = #tpu.core_type<tc>, window_params = [{transform_indices = @transform_0, window_bounds = array<i64: 8, 2, 64>}, {transform_indices = @transform_1, window_bounds = array<i64: 8, 2, 64>}, {pipeline_mode = #tpu.pipeline_mode<synchronous>, transform_indices = @transform_2, window_bounds = array<i64: 16, 64>}, {pipeline_mode = #tpu.pipeline_mode<synchronous>, transform_indices = @transform_3, window_bounds = array<i64: 16, 64>}, {transform_indices = @transform_4, window_bounds = array<i64: 8, 2, 32>}]} {
    %c0 = arith.constant 0 : index
    %c0_0 = arith.constant 0 : index
    %0 = vector.load %arg3[%c0, %c0_0] : memref<16x64xf32, #tpu.memory_space<vmem>>, vector<16x64xf32>
    %1 = arith.truncf %0 : vector<16x64xf32> to vector<16x64xbf16>
    %c0_1 = arith.constant 0 : index
    %c0_2 = arith.constant 0 : index
    %2 = vector.load %arg4[%c0_1, %c0_2] : memref<16x64xf32, #tpu.memory_space<vmem>>, vector<16x64xf32>
    %3 = arith.truncf %2 : vector<16x64xf32> to vector<16x64xbf16>
    %cst = arith.constant 0.000000e+00 : f32
    %4 = vector.broadcast %cst : f32 to vector<2x16xf32>
    %c0_i32 = arith.constant 0 : i32
    %c7_i32 = arith.constant 7 : i32
    %5 = arith.subi %c7_i32, %c0_i32 : i32
    %6 = arith.index_cast %c0_i32 : i32 to index
    %c0_3 = arith.constant 0 : index
    %c0_4 = arith.constant 0 : index
    %7 = vector.load %arg1[%6, %c0_3, %c0_4] : memref<8x2x64xf32, #tpu.memory_space<vmem>>, vector<1x2x64xf32>
    %8 = vector.shape_cast %7 : vector<1x2x64xf32> to vector<2x64xf32>
    %9 = arith.truncf %4 : vector<2x16xf32> to vector<2x16xbf16>
    %cst_5 = arith.constant dense<0.000000e+00> : vector<2x64xf32>
    %10 = tpu.matmul %9, %1, %cst_5 {dimension_numbers = #tpu.dot_dimension_numbers<[1], [0], [0], [1], [0, 0, 1, 1], [], []>} : vector<2x16xbf16>, vector<16x64xbf16>, vector<2x64xf32> -> vector<2x64xf32>
    %11 = arith.addf %8, %10 : vector<2x64xf32>
    %12 = arith.index_cast %5 : i32 to index
    %c0_6 = arith.constant 0 : index
    %c0_7 = arith.constant 0 : index
    %13 = vector.load %arg2[%12, %c0_6, %c0_7] : memref<8x2x64xf32, #tpu.memory_space<vmem>>, vector<1x2x64xf32>
    %14 = vector.shape_cast %13 : vector<1x2x64xf32> to vector<2x64xf32>
    %15 = arith.truncf %4 : vector<2x16xf32> to vector<2x16xbf16>
    %cst_8 = arith.constant dense<0.000000e+00> : vector<2x64xf32>
    %16 = tpu.matmul %15, %3, %cst_8 {dimension_numbers = #tpu.dot_dimension_numbers<[1], [0], [0], [1], [0, 0, 1, 1], [], []>} : vector<2x16xbf16>, vector<16x64xbf16>, vector<2x64xf32> -> vector<2x64xf32>
    %17 = arith.addf %14, %16 : vector<2x64xf32>
    %18 = vector.extract_strided_slice %11 {offsets = [0, 0], sizes = [2, 16], strides = [1, 1]} : vector<2x64xf32> to vector<2x16xf32>
    %19 = arith.negf %18 : vector<2x16xf32>
    %20 = math.exp %19 : vector<2x16xf32>
    %cst_9 = arith.constant 1.000000e+00 : f32
    %21 = vector.broadcast %cst_9 : f32 to vector<2x16xf32>
    %22 = arith.addf %21, %20 : vector<2x16xf32>
    %23 = arith.divf %21, %22 : vector<2x16xf32>
    %24 = vector.extract_strided_slice %11 {offsets = [0, 16], sizes = [2, 16], strides = [1, 1]} : vector<2x64xf32> to vector<2x16xf32>
    %25 = arith.negf %24 : vector<2x16xf32>
    %26 = math.exp %25 : vector<2x16xf32>
    %cst_10 = arith.constant 1.000000e+00 : f32
    %27 = vector.broadcast %cst_10 : f32 to vector<2x16xf32>
    %28 = arith.addf %27, %26 : vector<2x16xf32>
    %29 = arith.divf %27, %28 : vector<2x16xf32>
    %30 = vector.extract_strided_slice %11 {offsets = [0, 32], sizes = [2, 16], strides = [1, 1]} : vector<2x64xf32> to vector<2x16xf32>
    %31 = math.tanh %30 : vector<2x16xf32>
    %32 = vector.extract_strided_slice %11 {offsets = [0, 48], sizes = [2, 16], strides = [1, 1]} : vector<2x64xf32> to vector<2x16xf32>
    %33 = arith.negf %32 : vector<2x16xf32>
    %34 = math.exp %33 : vector<2x16xf32>
    %cst_11 = arith.constant 1.000000e+00 : f32
    %35 = vector.broadcast %cst_11 : f32 to vector<2x16xf32>
    %36 = arith.addf %35, %34 : vector<2x16xf32>
    %37 = arith.divf %35, %36 : vector<2x16xf32>
    %38 = arith.mulf %29, %4 : vector<2x16xf32>
    %39 = arith.mulf %23, %31 : vector<2x16xf32>
    %40 = arith.addf %38, %39 : vector<2x16xf32>
    %41 = math.tanh %40 : vector<2x16xf32>
    %42 = arith.mulf %37, %41 : vector<2x16xf32>
    %43 = vector.extract_strided_slice %17 {offsets = [0, 0], sizes = [2, 16], strides = [1, 1]} : vector<2x64xf32> to vector<2x16xf32>
    %44 = arith.negf %43 : vector<2x16xf32>
    %45 = math.exp %44 : vector<2x16xf32>
    %cst_12 = arith.constant 1.000000e+00 : f32
    %46 = vector.broadcast %cst_12 : f32 to vector<2x16xf32>
    %47 = arith.addf %46, %45 : vector<2x16xf32>
    %48 = arith.divf %46, %47 : vector<2x16xf32>
    %49 = vector.extract_strided_slice %17 {offsets = [0, 16], sizes = [2, 16], strides = [1, 1]} : vector<2x64xf32> to vector<2x16xf32>
    %50 = arith.negf %49 : vector<2x16xf32>
    %51 = math.exp %50 : vector<2x16xf32>
    %cst_13 = arith.constant 1.000000e+00 : f32
    %52 = vector.broadcast %cst_13 : f32 to vector<2x16xf32>
    %53 = arith.addf %52, %51 : vector<2x16xf32>
    %54 = arith.divf %52, %53 : vector<2x16xf32>
    %55 = vector.extract_strided_slice %17 {offsets = [0, 32], sizes = [2, 16], strides = [1, 1]} : vector<2x64xf32> to vector<2x16xf32>
    %56 = math.tanh %55 : vector<2x16xf32>
    %57 = vector.extract_strided_slice %17 {offsets = [0, 48], sizes = [2, 16], strides = [1, 1]} : vector<2x64xf32> to vector<2x16xf32>
    %58 = arith.negf %57 : vector<2x16xf32>
    %59 = math.exp %58 : vector<2x16xf32>
    %cst_14 = arith.constant 1.000000e+00 : f32
    %60 = vector.broadcast %cst_14 : f32 to vector<2x16xf32>
    %61 = arith.addf %60, %59 : vector<2x16xf32>
    %62 = arith.divf %60, %61 : vector<2x16xf32>
    %63 = arith.mulf %54, %4 : vector<2x16xf32>
    %64 = arith.mulf %48, %56 : vector<2x16xf32>
    %65 = arith.addf %63, %64 : vector<2x16xf32>
    %66 = math.tanh %65 : vector<2x16xf32>
    %67 = arith.mulf %62, %66 : vector<2x16xf32>
    %68 = arith.index_cast %c0_i32 : i32 to index
    %c0_15 = arith.constant 0 : index
    %c0_16 = arith.constant 0 : index
    %69 = vector.load %arg5[%68, %c0_15, %c0_16] : memref<8x2x32xf32, #tpu.memory_space<vmem>>, vector<1x2x16xf32>
    %70 = vector.shape_cast %69 : vector<1x2x16xf32> to vector<2x16xf32>
    %71 = vector.shape_cast %42 : vector<2x16xf32> to vector<1x2x16xf32>
    tpu.vector_store %arg5[%68, %c0_15, %c0_16], %71 {strides = array<i32>} : memref<8x2x32xf32, #tpu.memory_space<vmem>>, vector<1x2x16xf32>,
    %72 = arith.index_cast %5 : i32 to index
    %c0_17 = arith.constant 0 : index
    %c16 = arith.constant 16 : index
    %73 = vector.load %arg5[%72, %c0_17, %c16] : memref<8x2x32xf32, #tpu.memory_space<vmem>>, vector<1x2x16xf32>
    %74 = vector.shape_cast %73 : vector<1x2x16xf32> to vector<2x16xf32>
    %75 = vector.shape_cast %67 : vector<2x16xf32> to vector<1x2x16xf32>
    tpu.vector_store %arg5[%72, %c0_17, %c16], %75 {strides = array<i32>} : memref<8x2x32xf32, #tpu.memory_space<vmem>>, vector<1x2x16xf32>,
    %c1_i32 = arith.constant 1 : i32
    %c7_i32_18 = arith.constant 7 : i32
    %76 = arith.subi %c7_i32_18, %c1_i32 : i32
    %77 = arith.index_cast %c1_i32 : i32 to index
    %c0_19 = arith.constant 0 : index
    %c0_20 = arith.constant 0 : index
    %78 = vector.load %arg1[%77, %c0_19, %c0_20] : memref<8x2x64xf32, #tpu.memory_space<vmem>>, vector<1x2x64xf32>
    %79 = vector.shape_cast %78 : vector<1x2x64xf32> to vector<2x64xf32>
    %80 = arith.truncf %42 : vector<2x16xf32> to vector<2x16xbf16>
    %cst_21 = arith.constant dense<0.000000e+00> : vector<2x64xf32>
    %81 = tpu.matmul %80, %1, %cst_21 {dimension_numbers = #tpu.dot_dimension_numbers<[1], [0], [0], [1], [0, 0, 1, 1], [], []>} : vector<2x16xbf16>, vector<16x64xbf16>, vector<2x64xf32> -> vector<2x64xf32>
    %82 = arith.addf %79, %81 : vector<2x64xf32>
    %83 = arith.index_cast %76 : i32 to index
    %c0_22 = arith.constant 0 : index
    %c0_23 = arith.constant 0 : index
    %84 = vector.load %arg2[%83, %c0_22, %c0_23] : memref<8x2x64xf32, #tpu.memory_space<vmem>>, vector<1x2x64xf32>
    %85 = vector.shape_cast %84 : vector<1x2x64xf32> to vector<2x64xf32>
    %86 = arith.truncf %67 : vector<2x16xf32> to vector<2x16xbf16>
    %cst_24 = arith.constant dense<0.000000e+00> : vector<2x64xf32>
    %87 = tpu.matmul %86, %3, %cst_24 {dimension_numbers = #tpu.dot_dimension_numbers<[1], [0], [0], [1], [0, 0, 1, 1], [], []>} : vector<2x16xbf16>, vector<16x64xbf16>, vector<2x64xf32> -> vector<2x64xf32>
    %88 = arith.addf %85, %87 : vector<2x64xf32>
    %89 = vector.extract_strided_slice %82 {offsets = [0, 0], sizes = [2, 16], strides = [1, 1]} : vector<2x64xf32> to vector<2x16xf32>
    %90 = arith.negf %89 : vector<2x16xf32>
    %91 = math.exp %90 : vector<2x16xf32>
    %cst_25 = arith.constant 1.000000e+00 : f32
    %92 = vector.broadcast %cst_25 : f32 to vector<2x16xf32>
    %93 = arith.addf %92, %91 : vector<2x16xf32>
    %94 = arith.divf %92, %93 : vector<2x16xf32>
    %95 = vector.extract_strided_slice %82 {offsets = [0, 16], sizes = [2, 16], strides = [1, 1]} : vector<2x64xf32> to vector<2x16xf32>
    %96 = arith.negf %95 : vector<2x16xf32>
    %97 = math.exp %96 : vector<2x16xf32>
    %cst_26 = arith.constant 1.000000e+00 : f32
    %98 = vector.broadcast %cst_26 : f32 to vector<2x16xf32>
    %99 = arith.addf %98, %97 : vector<2x16xf32>
    %100 = arith.divf %98, %99 : vector<2x16xf32>
    %101 = vector.extract_strided_slice %82 {offsets = [0, 32], sizes = [2, 16], strides = [1, 1]} : vector<2x64xf32> to vector<2x16xf32>
    %102 = math.tanh %101 : vector<2x16xf32>
    %103 = vector.extract_strided_slice %82 {offsets = [0, 48], sizes = [2, 16], strides = [1, 1]} : vector<2x64xf32> to vector<2x16xf32>
    %104 = arith.negf %103 : vector<2x16xf32>
    %105 = math.exp %104 : vector<2x16xf32>
    %cst_27 = arith.constant 1.000000e+00 : f32
    %106 = vector.broadcast %cst_27 : f32 to vector<2x16xf32>
    %107 = arith.addf %106, %105 : vector<2x16xf32>
    %108 = arith.divf %106, %107 : vector<2x16xf32>
    %109 = arith.mulf %100, %40 : vector<2x16xf32>
    %110 = arith.mulf %94, %102 : vector<2x16xf32>
    %111 = arith.addf %109, %110 : vector<2x16xf32>
    %112 = math.tanh %111 : vector<2x16xf32>
    %113 = arith.mulf %108, %112 : vector<2x16xf32>
    %114 = vector.extract_strided_slice %88 {offsets = [0, 0], sizes = [2, 16], strides = [1, 1]} : vector<2x64xf32> to vector<2x16xf32>
    %115 = arith.negf %114 : vector<2x16xf32>
    %116 = math.exp %115 : vector<2x16xf32>
    %cst_28 = arith.constant 1.000000e+00 : f32
    %117 = vector.broadcast %cst_28 : f32 to vector<2x16xf32>
    %118 = arith.addf %117, %116 : vector<2x16xf32>
    %119 = arith.divf %117, %118 : vector<2x16xf32>
    %120 = vector.extract_strided_slice %88 {offsets = [0, 16], sizes = [2, 16], strides = [1, 1]} : vector<2x64xf32> to vector<2x16xf32>
    %121 = arith.negf %120 : vector<2x16xf32>
    %122 = math.exp %121 : vector<2x16xf32>
    %cst_29 = arith.constant 1.000000e+00 : f32
    %123 = vector.broadcast %cst_29 : f32 to vector<2x16xf32>
    %124 = arith.addf %123, %122 : vector<2x16xf32>
    %125 = arith.divf %123, %124 : vector<2x16xf32>
    %126 = vector.extract_strided_slice %88 {offsets = [0, 32], sizes = [2, 16], strides = [1, 1]} : vector<2x64xf32> to vector<2x16xf32>
    %127 = math.tanh %126 : vector<2x16xf32>
    %128 = vector.extract_strided_slice %88 {offsets = [0, 48], sizes = [2, 16], strides = [1, 1]} : vector<2x64xf32> to vector<2x16xf32>
    %129 = arith.negf %128 : vector<2x16xf32>
    %130 = math.exp %129 : vector<2x16xf32>
    %cst_30 = arith.constant 1.000000e+00 : f32
    %131 = vector.broadcast %cst_30 : f32 to vector<2x16xf32>
    %132 = arith.addf %131, %130 : vector<2x16xf32>
    %133 = arith.divf %131, %132 : vector<2x16xf32>
    %134 = arith.mulf %125, %65 : vector<2x16xf32>
    %135 = arith.mulf %119, %127 : vector<2x16xf32>
    %136 = arith.addf %134, %135 : vector<2x16xf32>
    %137 = math.tanh %136 : vector<2x16xf32>
    %138 = arith.mulf %133, %137 : vector<2x16xf32>
    %139 = arith.index_cast %c1_i32 : i32 to index
    %c0_31 = arith.constant 0 : index
    %c0_32 = arith.constant 0 : index
    %140 = vector.load %arg5[%139, %c0_31, %c0_32] : memref<8x2x32xf32, #tpu.memory_space<vmem>>, vector<1x2x16xf32>
    %141 = vector.shape_cast %140 : vector<1x2x16xf32> to vector<2x16xf32>
    %142 = vector.shape_cast %113 : vector<2x16xf32> to vector<1x2x16xf32>
    tpu.vector_store %arg5[%139, %c0_31, %c0_32], %142 {strides = array<i32>} : memref<8x2x32xf32, #tpu.memory_space<vmem>>, vector<1x2x16xf32>,
    %143 = arith.index_cast %76 : i32 to index
    %c0_33 = arith.constant 0 : index
    %c16_34 = arith.constant 16 : index
    %144 = vector.load %arg5[%143, %c0_33, %c16_34] : memref<8x2x32xf32, #tpu.memory_space<vmem>>, vector<1x2x16xf32>
    %145 = vector.shape_cast %144 : vector<1x2x16xf32> to vector<2x16xf32>
    %146 = vector.shape_cast %138 : vector<2x16xf32> to vector<1x2x16xf32>
    tpu.vector_store %arg5[%143, %c0_33, %c16_34], %146 {strides = array<i32>} : memref<8x2x32xf32, #tpu.memory_space<vmem>>, vector<1x2x16xf32>,
    %c2_i32 = arith.constant 2 : i32
    %c7_i32_35 = arith.constant 7 : i32
    %147 = arith.subi %c7_i32_35, %c2_i32 : i32
    %148 = arith.index_cast %c2_i32 : i32 to index
    %c0_36 = arith.constant 0 : index
    %c0_37 = arith.constant 0 : index
    %149 = vector.load %arg1[%148, %c0_36, %c0_37] : memref<8x2x64xf32, #tpu.memory_space<vmem>>, vector<1x2x64xf32>
    %150 = vector.shape_cast %149 : vector<1x2x64xf32> to vector<2x64xf32>
    %151 = arith.truncf %113 : vector<2x16xf32> to vector<2x16xbf16>
    %cst_38 = arith.constant dense<0.000000e+00> : vector<2x64xf32>
    %152 = tpu.matmul %151, %1, %cst_38 {dimension_numbers = #tpu.dot_dimension_numbers<[1], [0], [0], [1], [0, 0, 1, 1], [], []>} : vector<2x16xbf16>, vector<16x64xbf16>, vector<2x64xf32> -> vector<2x64xf32>
    %153 = arith.addf %150, %152 : vector<2x64xf32>
    %154 = arith.index_cast %147 : i32 to index
    %c0_39 = arith.constant 0 : index
    %c0_40 = arith.constant 0 : index
    %155 = vector.load %arg2[%154, %c0_39, %c0_40] : memref<8x2x64xf32, #tpu.memory_space<vmem>>, vector<1x2x64xf32>
    %156 = vector.shape_cast %155 : vector<1x2x64xf32> to vector<2x64xf32>
    %157 = arith.truncf %138 : vector<2x16xf32> to vector<2x16xbf16>
    %cst_41 = arith.constant dense<0.000000e+00> : vector<2x64xf32>
    %158 = tpu.matmul %157, %3, %cst_41 {dimension_numbers = #tpu.dot_dimension_numbers<[1], [0], [0], [1], [0, 0, 1, 1], [], []>} : vector<2x16xbf16>, vector<16x64xbf16>, vector<2x64xf32> -> vector<2x64xf32>
    %159 = arith.addf %156, %158 : vector<2x64xf32>
    %160 = vector.extract_strided_slice %153 {offsets = [0, 0], sizes = [2, 16], strides = [1, 1]} : vector<2x64xf32> to vector<2x16xf32>
    %161 = arith.negf %160 : vector<2x16xf32>
    %162 = math.exp %161 : vector<2x16xf32>
    %cst_42 = arith.constant 1.000000e+00 : f32
    %163 = vector.broadcast %cst_42 : f32 to vector<2x16xf32>
    %164 = arith.addf %163, %162 : vector<2x16xf32>
    %165 = arith.divf %163, %164 : vector<2x16xf32>
    %166 = vector.extract_strided_slice %153 {offsets = [0, 16], sizes = [2, 16], strides = [1, 1]} : vector<2x64xf32> to vector<2x16xf32>
    %167 = arith.negf %166 : vector<2x16xf32>
    %168 = math.exp %167 : vector<2x16xf32>
    %cst_43 = arith.constant 1.000000e+00 : f32
    %169 = vector.broadcast %cst_43 : f32 to vector<2x16xf32>
    %170 = arith.addf %169, %168 : vector<2x16xf32>
    %171 = arith.divf %169, %170 : vector<2x16xf32>
    %172 = vector.extract_strided_slice %153 {offsets = [0, 32], sizes = [2, 16], strides = [1, 1]} : vector<2x64xf32> to vector<2x16xf32>
    %173 = math.tanh %172 : vector<2x16xf32>
    %174 = vector.extract_strided_slice %153 {offsets = [0, 48], sizes = [2, 16], strides = [1, 1]} : vector<2x64xf32> to vector<2x16xf32>
    %175 = arith.negf %174 : vector<2x16xf32>
    %176 = math.exp %175 : vector<2x16xf32>
    %cst_44 = arith.constant 1.000000e+00 : f32
    %177 = vector.broadcast %cst_44 : f32 to vector<2x16xf32>
    %178 = arith.addf %177, %176 : vector<2x16xf32>
    %179 = arith.divf %177, %178 : vector<2x16xf32>
    %180 = arith.mulf %171, %111 : vector<2x16xf32>
    %181 = arith.mulf %165, %173 : vector<2x16xf32>
    %182 = arith.addf %180, %181 : vector<2x16xf32>
    %183 = math.tanh %182 : vector<2x16xf32>
    %184 = arith.mulf %179, %183 : vector<2x16xf32>
    %185 = vector.extract_strided_slice %159 {offsets = [0, 0], sizes = [2, 16], strides = [1, 1]} : vector<2x64xf32> to vector<2x16xf32>
    %186 = arith.negf %185 : vector<2x16xf32>
    %187 = math.exp %186 : vector<2x16xf32>
    %cst_45 = arith.constant 1.000000e+00 : f32
    %188 = vector.broadcast %cst_45 : f32 to vector<2x16xf32>
    %189 = arith.addf %188, %187 : vector<2x16xf32>
    %190 = arith.divf %188, %189 : vector<2x16xf32>
    %191 = vector.extract_strided_slice %159 {offsets = [0, 16], sizes = [2, 16], strides = [1, 1]} : vector<2x64xf32> to vector<2x16xf32>
    %192 = arith.negf %191 : vector<2x16xf32>
    %193 = math.exp %192 : vector<2x16xf32>
    %cst_46 = arith.constant 1.000000e+00 : f32
    %194 = vector.broadcast %cst_46 : f32 to vector<2x16xf32>
    %195 = arith.addf %194, %193 : vector<2x16xf32>
    %196 = arith.divf %194, %195 : vector<2x16xf32>
    %197 = vector.extract_strided_slice %159 {offsets = [0, 32], sizes = [2, 16], strides = [1, 1]} : vector<2x64xf32> to vector<2x16xf32>
    %198 = math.tanh %197 : vector<2x16xf32>
    %199 = vector.extract_strided_slice %159 {offsets = [0, 48], sizes = [2, 16], strides = [1, 1]} : vector<2x64xf32> to vector<2x16xf32>
    %200 = arith.negf %199 : vector<2x16xf32>
    %201 = math.exp %200 : vector<2x16xf32>
    %cst_47 = arith.constant 1.000000e+00 : f32
    %202 = vector.broadcast %cst_47 : f32 to vector<2x16xf32>
    %203 = arith.addf %202, %201 : vector<2x16xf32>
    %204 = arith.divf %202, %203 : vector<2x16xf32>
    %205 = arith.mulf %196, %136 : vector<2x16xf32>
    %206 = arith.mulf %190, %198 : vector<2x16xf32>
    %207 = arith.addf %205, %206 : vector<2x16xf32>
    %208 = math.tanh %207 : vector<2x16xf32>
    %209 = arith.mulf %204, %208 : vector<2x16xf32>
    %210 = arith.index_cast %c2_i32 : i32 to index
    %c0_48 = arith.constant 0 : index
    %c0_49 = arith.constant 0 : index
    %211 = vector.load %arg5[%210, %c0_48, %c0_49] : memref<8x2x32xf32, #tpu.memory_space<vmem>>, vector<1x2x16xf32>
    %212 = vector.shape_cast %211 : vector<1x2x16xf32> to vector<2x16xf32>
    %213 = vector.shape_cast %184 : vector<2x16xf32> to vector<1x2x16xf32>
    tpu.vector_store %arg5[%210, %c0_48, %c0_49], %213 {strides = array<i32>} : memref<8x2x32xf32, #tpu.memory_space<vmem>>, vector<1x2x16xf32>,
    %214 = arith.index_cast %147 : i32 to index
    %c0_50 = arith.constant 0 : index
    %c16_51 = arith.constant 16 : index
    %215 = vector.load %arg5[%214, %c0_50, %c16_51] : memref<8x2x32xf32, #tpu.memory_space<vmem>>, vector<1x2x16xf32>
    %216 = vector.shape_cast %215 : vector<1x2x16xf32> to vector<2x16xf32>
    %217 = vector.shape_cast %209 : vector<2x16xf32> to vector<1x2x16xf32>
    tpu.vector_store %arg5[%214, %c0_50, %c16_51], %217 {strides = array<i32>} : memref<8x2x32xf32, #tpu.memory_space<vmem>>, vector<1x2x16xf32>,
    %c3_i32 = arith.constant 3 : i32
    %c7_i32_52 = arith.constant 7 : i32
    %218 = arith.subi %c7_i32_52, %c3_i32 : i32
    %219 = arith.index_cast %c3_i32 : i32 to index
    %c0_53 = arith.constant 0 : index
    %c0_54 = arith.constant 0 : index
    %220 = vector.load %arg1[%219, %c0_53, %c0_54] : memref<8x2x64xf32, #tpu.memory_space<vmem>>, vector<1x2x64xf32>
    %221 = vector.shape_cast %220 : vector<1x2x64xf32> to vector<2x64xf32>
    %222 = arith.truncf %184 : vector<2x16xf32> to vector<2x16xbf16>
    %cst_55 = arith.constant dense<0.000000e+00> : vector<2x64xf32>
    %223 = tpu.matmul %222, %1, %cst_55 {dimension_numbers = #tpu.dot_dimension_numbers<[1], [0], [0], [1], [0, 0, 1, 1], [], []>} : vector<2x16xbf16>, vector<16x64xbf16>, vector<2x64xf32> -> vector<2x64xf32>
    %224 = arith.addf %221, %223 : vector<2x64xf32>
    %225 = arith.index_cast %218 : i32 to index
    %c0_56 = arith.constant 0 : index
    %c0_57 = arith.constant 0 : index
    %226 = vector.load %arg2[%225, %c0_56, %c0_57] : memref<8x2x64xf32, #tpu.memory_space<vmem>>, vector<1x2x64xf32>
    %227 = vector.shape_cast %226 : vector<1x2x64xf32> to vector<2x64xf32>
    %228 = arith.truncf %209 : vector<2x16xf32> to vector<2x16xbf16>
    %cst_58 = arith.constant dense<0.000000e+00> : vector<2x64xf32>
    %229 = tpu.matmul %228, %3, %cst_58 {dimension_numbers = #tpu.dot_dimension_numbers<[1], [0], [0], [1], [0, 0, 1, 1], [], []>} : vector<2x16xbf16>, vector<16x64xbf16>, vector<2x64xf32> -> vector<2x64xf32>
    %230 = arith.addf %227, %229 : vector<2x64xf32>
    %231 = vector.extract_strided_slice %224 {offsets = [0, 0], sizes = [2, 16], strides = [1, 1]} : vector<2x64xf32> to vector<2x16xf32>
    %232 = arith.negf %231 : vector<2x16xf32>
    %233 = math.exp %232 : vector<2x16xf32>
    %cst_59 = arith.constant 1.000000e+00 : f32
    %234 = vector.broadcast %cst_59 : f32 to vector<2x16xf32>
    %235 = arith.addf %234, %233 : vector<2x16xf32>
    %236 = arith.divf %234, %235 : vector<2x16xf32>
    %237 = vector.extract_strided_slice %224 {offsets = [0, 16], sizes = [2, 16], strides = [1, 1]} : vector<2x64xf32> to vector<2x16xf32>
    %238 = arith.negf %237 : vector<2x16xf32>
    %239 = math.exp %238 : vector<2x16xf32>
    %cst_60 = arith.constant 1.000000e+00 : f32
    %240 = vector.broadcast %cst_60 : f32 to vector<2x16xf32>
    %241 = arith.addf %240, %239 : vector<2x16xf32>
    %242 = arith.divf %240, %241 : vector<2x16xf32>
    %243 = vector.extract_strided_slice %224 {offsets = [0, 32], sizes = [2, 16], strides = [1, 1]} : vector<2x64xf32> to vector<2x16xf32>
    %244 = math.tanh %243 : vector<2x16xf32>
    %245 = vector.extract_strided_slice %224 {offsets = [0, 48], sizes = [2, 16], strides = [1, 1]} : vector<2x64xf32> to vector<2x16xf32>
    %246 = arith.negf %245 : vector<2x16xf32>
    %247 = math.exp %246 : vector<2x16xf32>
    %cst_61 = arith.constant 1.000000e+00 : f32
    %248 = vector.broadcast %cst_61 : f32 to vector<2x16xf32>
    %249 = arith.addf %248, %247 : vector<2x16xf32>
    %250 = arith.divf %248, %249 : vector<2x16xf32>
    %251 = arith.mulf %242, %182 : vector<2x16xf32>
    %252 = arith.mulf %236, %244 : vector<2x16xf32>
    %253 = arith.addf %251, %252 : vector<2x16xf32>
    %254 = math.tanh %253 : vector<2x16xf32>
    %255 = arith.mulf %250, %254 : vector<2x16xf32>
    %256 = vector.extract_strided_slice %230 {offsets = [0, 0], sizes = [2, 16], strides = [1, 1]} : vector<2x64xf32> to vector<2x16xf32>
    %257 = arith.negf %256 : vector<2x16xf32>
    %258 = math.exp %257 : vector<2x16xf32>
    %cst_62 = arith.constant 1.000000e+00 : f32
    %259 = vector.broadcast %cst_62 : f32 to vector<2x16xf32>
    %260 = arith.addf %259, %258 : vector<2x16xf32>
    %261 = arith.divf %259, %260 : vector<2x16xf32>
    %262 = vector.extract_strided_slice %230 {offsets = [0, 16], sizes = [2, 16], strides = [1, 1]} : vector<2x64xf32> to vector<2x16xf32>
    %263 = arith.negf %262 : vector<2x16xf32>
    %264 = math.exp %263 : vector<2x16xf32>
    %cst_63 = arith.constant 1.000000e+00 : f32
    %265 = vector.broadcast %cst_63 : f32 to vector<2x16xf32>
    %266 = arith.addf %265, %264 : vector<2x16xf32>
    %267 = arith.divf %265, %266 : vector<2x16xf32>
    %268 = vector.extract_strided_slice %230 {offsets = [0, 32], sizes = [2, 16], strides = [1, 1]} : vector<2x64xf32> to vector<2x16xf32>
    %269 = math.tanh %268 : vector<2x16xf32>
    %270 = vector.extract_strided_slice %230 {offsets = [0, 48], sizes = [2, 16], strides = [1, 1]} : vector<2x64xf32> to vector<2x16xf32>
    %271 = arith.negf %270 : vector<2x16xf32>
    %272 = math.exp %271 : vector<2x16xf32>
    %cst_64 = arith.constant 1.000000e+00 : f32
    %273 = vector.broadcast %cst_64 : f32 to vector<2x16xf32>
    %274 = arith.addf %273, %272 : vector<2x16xf32>
    %275 = arith.divf %273, %274 : vector<2x16xf32>
    %276 = arith.mulf %267, %207 : vector<2x16xf32>
    %277 = arith.mulf %261, %269 : vector<2x16xf32>
    %278 = arith.addf %276, %277 : vector<2x16xf32>
    %279 = math.tanh %278 : vector<2x16xf32>
    %280 = arith.mulf %275, %279 : vector<2x16xf32>
    %281 = arith.index_cast %c3_i32 : i32 to index
    %c0_65 = arith.constant 0 : index
    %c0_66 = arith.constant 0 : index
    %282 = vector.load %arg5[%281, %c0_65, %c0_66] : memref<8x2x32xf32, #tpu.memory_space<vmem>>, vector<1x2x16xf32>
    %283 = vector.shape_cast %282 : vector<1x2x16xf32> to vector<2x16xf32>
    %284 = vector.shape_cast %255 : vector<2x16xf32> to vector<1x2x16xf32>
    tpu.vector_store %arg5[%281, %c0_65, %c0_66], %284 {strides = array<i32>} : memref<8x2x32xf32, #tpu.memory_space<vmem>>, vector<1x2x16xf32>,
    %285 = arith.index_cast %218 : i32 to index
    %c0_67 = arith.constant 0 : index
    %c16_68 = arith.constant 16 : index
    %286 = vector.load %arg5[%285, %c0_67, %c16_68] : memref<8x2x32xf32, #tpu.memory_space<vmem>>, vector<1x2x16xf32>
    %287 = vector.shape_cast %286 : vector<1x2x16xf32> to vector<2x16xf32>
    %288 = vector.shape_cast %280 : vector<2x16xf32> to vector<1x2x16xf32>
    tpu.vector_store %arg5[%285, %c0_67, %c16_68], %288 {strides = array<i32>} : memref<8x2x32xf32, #tpu.memory_space<vmem>>, vector<1x2x16xf32>,
    %c4_i32 = arith.constant 4 : i32
    %c7_i32_69 = arith.constant 7 : i32
    %289 = arith.subi %c7_i32_69, %c4_i32 : i32
    %290 = arith.index_cast %c4_i32 : i32 to index
    %c0_70 = arith.constant 0 : index
    %c0_71 = arith.constant 0 : index
    %291 = vector.load %arg1[%290, %c0_70, %c0_71] : memref<8x2x64xf32, #tpu.memory_space<vmem>>, vector<1x2x64xf32>
    %292 = vector.shape_cast %291 : vector<1x2x64xf32> to vector<2x64xf32>
    %293 = arith.truncf %255 : vector<2x16xf32> to vector<2x16xbf16>
    %cst_72 = arith.constant dense<0.000000e+00> : vector<2x64xf32>
    %294 = tpu.matmul %293, %1, %cst_72 {dimension_numbers = #tpu.dot_dimension_numbers<[1], [0], [0], [1], [0, 0, 1, 1], [], []>} : vector<2x16xbf16>, vector<16x64xbf16>, vector<2x64xf32> -> vector<2x64xf32>
    %295 = arith.addf %292, %294 : vector<2x64xf32>
    %296 = arith.index_cast %289 : i32 to index
    %c0_73 = arith.constant 0 : index
    %c0_74 = arith.constant 0 : index
    %297 = vector.load %arg2[%296, %c0_73, %c0_74] : memref<8x2x64xf32, #tpu.memory_space<vmem>>, vector<1x2x64xf32>
    %298 = vector.shape_cast %297 : vector<1x2x64xf32> to vector<2x64xf32>
    %299 = arith.truncf %280 : vector<2x16xf32> to vector<2x16xbf16>
    %cst_75 = arith.constant dense<0.000000e+00> : vector<2x64xf32>
    %300 = tpu.matmul %299, %3, %cst_75 {dimension_numbers = #tpu.dot_dimension_numbers<[1], [0], [0], [1], [0, 0, 1, 1], [], []>} : vector<2x16xbf16>, vector<16x64xbf16>, vector<2x64xf32> -> vector<2x64xf32>
    %301 = arith.addf %298, %300 : vector<2x64xf32>
    %302 = vector.extract_strided_slice %295 {offsets = [0, 0], sizes = [2, 16], strides = [1, 1]} : vector<2x64xf32> to vector<2x16xf32>
    %303 = arith.negf %302 : vector<2x16xf32>
    %304 = math.exp %303 : vector<2x16xf32>
    %cst_76 = arith.constant 1.000000e+00 : f32
    %305 = vector.broadcast %cst_76 : f32 to vector<2x16xf32>
    %306 = arith.addf %305, %304 : vector<2x16xf32>
    %307 = arith.divf %305, %306 : vector<2x16xf32>
    %308 = vector.extract_strided_slice %295 {offsets = [0, 16], sizes = [2, 16], strides = [1, 1]} : vector<2x64xf32> to vector<2x16xf32>
    %309 = arith.negf %308 : vector<2x16xf32>
    %310 = math.exp %309 : vector<2x16xf32>
    %cst_77 = arith.constant 1.000000e+00 : f32
    %311 = vector.broadcast %cst_77 : f32 to vector<2x16xf32>
    %312 = arith.addf %311, %310 : vector<2x16xf32>
    %313 = arith.divf %311, %312 : vector<2x16xf32>
    %314 = vector.extract_strided_slice %295 {offsets = [0, 32], sizes = [2, 16], strides = [1, 1]} : vector<2x64xf32> to vector<2x16xf32>
    %315 = math.tanh %314 : vector<2x16xf32>
    %316 = vector.extract_strided_slice %295 {offsets = [0, 48], sizes = [2, 16], strides = [1, 1]} : vector<2x64xf32> to vector<2x16xf32>
    %317 = arith.negf %316 : vector<2x16xf32>
    %318 = math.exp %317 : vector<2x16xf32>
    %cst_78 = arith.constant 1.000000e+00 : f32
    %319 = vector.broadcast %cst_78 : f32 to vector<2x16xf32>
    %320 = arith.addf %319, %318 : vector<2x16xf32>
    %321 = arith.divf %319, %320 : vector<2x16xf32>
    %322 = arith.mulf %313, %253 : vector<2x16xf32>
    %323 = arith.mulf %307, %315 : vector<2x16xf32>
    %324 = arith.addf %322, %323 : vector<2x16xf32>
    %325 = math.tanh %324 : vector<2x16xf32>
    %326 = arith.mulf %321, %325 : vector<2x16xf32>
    %327 = vector.extract_strided_slice %301 {offsets = [0, 0], sizes = [2, 16], strides = [1, 1]} : vector<2x64xf32> to vector<2x16xf32>
    %328 = arith.negf %327 : vector<2x16xf32>
    %329 = math.exp %328 : vector<2x16xf32>
    %cst_79 = arith.constant 1.000000e+00 : f32
    %330 = vector.broadcast %cst_79 : f32 to vector<2x16xf32>
    %331 = arith.addf %330, %329 : vector<2x16xf32>
    %332 = arith.divf %330, %331 : vector<2x16xf32>
    %333 = vector.extract_strided_slice %301 {offsets = [0, 16], sizes = [2, 16], strides = [1, 1]} : vector<2x64xf32> to vector<2x16xf32>
    %334 = arith.negf %333 : vector<2x16xf32>
    %335 = math.exp %334 : vector<2x16xf32>
    %cst_80 = arith.constant 1.000000e+00 : f32
    %336 = vector.broadcast %cst_80 : f32 to vector<2x16xf32>
    %337 = arith.addf %336, %335 : vector<2x16xf32>
    %338 = arith.divf %336, %337 : vector<2x16xf32>
    %339 = vector.extract_strided_slice %301 {offsets = [0, 32], sizes = [2, 16], strides = [1, 1]} : vector<2x64xf32> to vector<2x16xf32>
    %340 = math.tanh %339 : vector<2x16xf32>
    %341 = vector.extract_strided_slice %301 {offsets = [0, 48], sizes = [2, 16], strides = [1, 1]} : vector<2x64xf32> to vector<2x16xf32>
    %342 = arith.negf %341 : vector<2x16xf32>
    %343 = math.exp %342 : vector<2x16xf32>
    %cst_81 = arith.constant 1.000000e+00 : f32
    %344 = vector.broadcast %cst_81 : f32 to vector<2x16xf32>
    %345 = arith.addf %344, %343 : vector<2x16xf32>
    %346 = arith.divf %344, %345 : vector<2x16xf32>
    %347 = arith.mulf %338, %278 : vector<2x16xf32>
    %348 = arith.mulf %332, %340 : vector<2x16xf32>
    %349 = arith.addf %347, %348 : vector<2x16xf32>
    %350 = math.tanh %349 : vector<2x16xf32>
    %351 = arith.mulf %346, %350 : vector<2x16xf32>
    %352 = arith.index_cast %c4_i32 : i32 to index
    %c0_82 = arith.constant 0 : index
    %c0_83 = arith.constant 0 : index
    %353 = vector.load %arg5[%352, %c0_82, %c0_83] : memref<8x2x32xf32, #tpu.memory_space<vmem>>, vector<1x2x16xf32>
    %354 = vector.shape_cast %353 : vector<1x2x16xf32> to vector<2x16xf32>
    %355 = vector.shape_cast %326 : vector<2x16xf32> to vector<1x2x16xf32>
    tpu.vector_store %arg5[%352, %c0_82, %c0_83], %355 {strides = array<i32>} : memref<8x2x32xf32, #tpu.memory_space<vmem>>, vector<1x2x16xf32>,
    %356 = arith.index_cast %289 : i32 to index
    %c0_84 = arith.constant 0 : index
    %c16_85 = arith.constant 16 : index
    %357 = vector.load %arg5[%356, %c0_84, %c16_85] : memref<8x2x32xf32, #tpu.memory_space<vmem>>, vector<1x2x16xf32>
    %358 = vector.shape_cast %357 : vector<1x2x16xf32> to vector<2x16xf32>
    %359 = vector.shape_cast %351 : vector<2x16xf32> to vector<1x2x16xf32>
    tpu.vector_store %arg5[%356, %c0_84, %c16_85], %359 {strides = array<i32>} : memref<8x2x32xf32, #tpu.memory_space<vmem>>, vector<1x2x16xf32>,
    %c5_i32 = arith.constant 5 : i32
    %c7_i32_86 = arith.constant 7 : i32
    %360 = arith.subi %c7_i32_86, %c5_i32 : i32
    %361 = arith.index_cast %c5_i32 : i32 to index
    %c0_87 = arith.constant 0 : index
    %c0_88 = arith.constant 0 : index
    %362 = vector.load %arg1[%361, %c0_87, %c0_88] : memref<8x2x64xf32, #tpu.memory_space<vmem>>, vector<1x2x64xf32>
    %363 = vector.shape_cast %362 : vector<1x2x64xf32> to vector<2x64xf32>
    %364 = arith.truncf %326 : vector<2x16xf32> to vector<2x16xbf16>
    %cst_89 = arith.constant dense<0.000000e+00> : vector<2x64xf32>
    %365 = tpu.matmul %364, %1, %cst_89 {dimension_numbers = #tpu.dot_dimension_numbers<[1], [0], [0], [1], [0, 0, 1, 1], [], []>} : vector<2x16xbf16>, vector<16x64xbf16>, vector<2x64xf32> -> vector<2x64xf32>
    %366 = arith.addf %363, %365 : vector<2x64xf32>
    %367 = arith.index_cast %360 : i32 to index
    %c0_90 = arith.constant 0 : index
    %c0_91 = arith.constant 0 : index
    %368 = vector.load %arg2[%367, %c0_90, %c0_91] : memref<8x2x64xf32, #tpu.memory_space<vmem>>, vector<1x2x64xf32>
    %369 = vector.shape_cast %368 : vector<1x2x64xf32> to vector<2x64xf32>
    %370 = arith.truncf %351 : vector<2x16xf32> to vector<2x16xbf16>
    %cst_92 = arith.constant dense<0.000000e+00> : vector<2x64xf32>
    %371 = tpu.matmul %370, %3, %cst_92 {dimension_numbers = #tpu.dot_dimension_numbers<[1], [0], [0], [1], [0, 0, 1, 1], [], []>} : vector<2x16xbf16>, vector<16x64xbf16>, vector<2x64xf32> -> vector<2x64xf32>
    %372 = arith.addf %369, %371 : vector<2x64xf32>
    %373 = vector.extract_strided_slice %366 {offsets = [0, 0], sizes = [2, 16], strides = [1, 1]} : vector<2x64xf32> to vector<2x16xf32>
    %374 = arith.negf %373 : vector<2x16xf32>
    %375 = math.exp %374 : vector<2x16xf32>
    %cst_93 = arith.constant 1.000000e+00 : f32
    %376 = vector.broadcast %cst_93 : f32 to vector<2x16xf32>
    %377 = arith.addf %376, %375 : vector<2x16xf32>
    %378 = arith.divf %376, %377 : vector<2x16xf32>
    %379 = vector.extract_strided_slice %366 {offsets = [0, 16], sizes = [2, 16], strides = [1, 1]} : vector<2x64xf32> to vector<2x16xf32>
    %380 = arith.negf %379 : vector<2x16xf32>
    %381 = math.exp %380 : vector<2x16xf32>
    %cst_94 = arith.constant 1.000000e+00 : f32
    %382 = vector.broadcast %cst_94 : f32 to vector<2x16xf32>
    %383 = arith.addf %382, %381 : vector<2x16xf32>
    %384 = arith.divf %382, %383 : vector<2x16xf32>
    %385 = vector.extract_strided_slice %366 {offsets = [0, 32], sizes = [2, 16], strides = [1, 1]} : vector<2x64xf32> to vector<2x16xf32>
    %386 = math.tanh %385 : vector<2x16xf32>
    %387 = vector.extract_strided_slice %366 {offsets = [0, 48], sizes = [2, 16], strides = [1, 1]} : vector<2x64xf32> to vector<2x16xf32>
    %388 = arith.negf %387 : vector<2x16xf32>
    %389 = math.exp %388 : vector<2x16xf32>
    %cst_95 = arith.constant 1.000000e+00 : f32
    %390 = vector.broadcast %cst_95 : f32 to vector<2x16xf32>
    %391 = arith.addf %390, %389 : vector<2x16xf32>
    %392 = arith.divf %390, %391 : vector<2x16xf32>
    %393 = arith.mulf %384, %324 : vector<2x16xf32>
    %394 = arith.mulf %378, %386 : vector<2x16xf32>
    %395 = arith.addf %393, %394 : vector<2x16xf32>
    %396 = math.tanh %395 : vector<2x16xf32>
    %397 = arith.mulf %392, %396 : vector<2x16xf32>
    %398 = vector.extract_strided_slice %372 {offsets = [0, 0], sizes = [2, 16], strides = [1, 1]} : vector<2x64xf32> to vector<2x16xf32>
    %399 = arith.negf %398 : vector<2x16xf32>
    %400 = math.exp %399 : vector<2x16xf32>
    %cst_96 = arith.constant 1.000000e+00 : f32
    %401 = vector.broadcast %cst_96 : f32 to vector<2x16xf32>
    %402 = arith.addf %401, %400 : vector<2x16xf32>
    %403 = arith.divf %401, %402 : vector<2x16xf32>
    %404 = vector.extract_strided_slice %372 {offsets = [0, 16], sizes = [2, 16], strides = [1, 1]} : vector<2x64xf32> to vector<2x16xf32>
    %405 = arith.negf %404 : vector<2x16xf32>
    %406 = math.exp %405 : vector<2x16xf32>
    %cst_97 = arith.constant 1.000000e+00 : f32
    %407 = vector.broadcast %cst_97 : f32 to vector<2x16xf32>
    %408 = arith.addf %407, %406 : vector<2x16xf32>
    %409 = arith.divf %407, %408 : vector<2x16xf32>
    %410 = vector.extract_strided_slice %372 {offsets = [0, 32], sizes = [2, 16], strides = [1, 1]} : vector<2x64xf32> to vector<2x16xf32>
    %411 = math.tanh %410 : vector<2x16xf32>
    %412 = vector.extract_strided_slice %372 {offsets = [0, 48], sizes = [2, 16], strides = [1, 1]} : vector<2x64xf32> to vector<2x16xf32>
    %413 = arith.negf %412 : vector<2x16xf32>
    %414 = math.exp %413 : vector<2x16xf32>
    %cst_98 = arith.constant 1.000000e+00 : f32
    %415 = vector.broadcast %cst_98 : f32 to vector<2x16xf32>
    %416 = arith.addf %415, %414 : vector<2x16xf32>
    %417 = arith.divf %415, %416 : vector<2x16xf32>
    %418 = arith.mulf %409, %349 : vector<2x16xf32>
    %419 = arith.mulf %403, %411 : vector<2x16xf32>
    %420 = arith.addf %418, %419 : vector<2x16xf32>
    %421 = math.tanh %420 : vector<2x16xf32>
    %422 = arith.mulf %417, %421 : vector<2x16xf32>
    %423 = arith.index_cast %c5_i32 : i32 to index
    %c0_99 = arith.constant 0 : index
    %c0_100 = arith.constant 0 : index
    %424 = vector.load %arg5[%423, %c0_99, %c0_100] : memref<8x2x32xf32, #tpu.memory_space<vmem>>, vector<1x2x16xf32>
    %425 = vector.shape_cast %424 : vector<1x2x16xf32> to vector<2x16xf32>
    %426 = vector.shape_cast %397 : vector<2x16xf32> to vector<1x2x16xf32>
    tpu.vector_store %arg5[%423, %c0_99, %c0_100], %426 {strides = array<i32>} : memref<8x2x32xf32, #tpu.memory_space<vmem>>, vector<1x2x16xf32>,
    %427 = arith.index_cast %360 : i32 to index
    %c0_101 = arith.constant 0 : index
    %c16_102 = arith.constant 16 : index
    %428 = vector.load %arg5[%427, %c0_101, %c16_102] : memref<8x2x32xf32, #tpu.memory_space<vmem>>, vector<1x2x16xf32>
    %429 = vector.shape_cast %428 : vector<1x2x16xf32> to vector<2x16xf32>
    %430 = vector.shape_cast %422 : vector<2x16xf32> to vector<1x2x16xf32>
    tpu.vector_store %arg5[%427, %c0_101, %c16_102], %430 {strides = array<i32>} : memref<8x2x32xf32, #tpu.memory_space<vmem>>, vector<1x2x16xf32>,
    %c6_i32 = arith.constant 6 : i32
    %c7_i32_103 = arith.constant 7 : i32
    %431 = arith.subi %c7_i32_103, %c6_i32 : i32
    %432 = arith.index_cast %c6_i32 : i32 to index
    %c0_104 = arith.constant 0 : index
    %c0_105 = arith.constant 0 : index
    %433 = vector.load %arg1[%432, %c0_104, %c0_105] : memref<8x2x64xf32, #tpu.memory_space<vmem>>, vector<1x2x64xf32>
    %434 = vector.shape_cast %433 : vector<1x2x64xf32> to vector<2x64xf32>
    %435 = arith.truncf %397 : vector<2x16xf32> to vector<2x16xbf16>
    %cst_106 = arith.constant dense<0.000000e+00> : vector<2x64xf32>
    %436 = tpu.matmul %435, %1, %cst_106 {dimension_numbers = #tpu.dot_dimension_numbers<[1], [0], [0], [1], [0, 0, 1, 1], [], []>} : vector<2x16xbf16>, vector<16x64xbf16>, vector<2x64xf32> -> vector<2x64xf32>
    %437 = arith.addf %434, %436 : vector<2x64xf32>
    %438 = arith.index_cast %431 : i32 to index
    %c0_107 = arith.constant 0 : index
    %c0_108 = arith.constant 0 : index
    %439 = vector.load %arg2[%438, %c0_107, %c0_108] : memref<8x2x64xf32, #tpu.memory_space<vmem>>, vector<1x2x64xf32>
    %440 = vector.shape_cast %439 : vector<1x2x64xf32> to vector<2x64xf32>
    %441 = arith.truncf %422 : vector<2x16xf32> to vector<2x16xbf16>
    %cst_109 = arith.constant dense<0.000000e+00> : vector<2x64xf32>
    %442 = tpu.matmul %441, %3, %cst_109 {dimension_numbers = #tpu.dot_dimension_numbers<[1], [0], [0], [1], [0, 0, 1, 1], [], []>} : vector<2x16xbf16>, vector<16x64xbf16>, vector<2x64xf32> -> vector<2x64xf32>
    %443 = arith.addf %440, %442 : vector<2x64xf32>
    %444 = vector.extract_strided_slice %437 {offsets = [0, 0], sizes = [2, 16], strides = [1, 1]} : vector<2x64xf32> to vector<2x16xf32>
    %445 = arith.negf %444 : vector<2x16xf32>
    %446 = math.exp %445 : vector<2x16xf32>
    %cst_110 = arith.constant 1.000000e+00 : f32
    %447 = vector.broadcast %cst_110 : f32 to vector<2x16xf32>
    %448 = arith.addf %447, %446 : vector<2x16xf32>
    %449 = arith.divf %447, %448 : vector<2x16xf32>
    %450 = vector.extract_strided_slice %437 {offsets = [0, 16], sizes = [2, 16], strides = [1, 1]} : vector<2x64xf32> to vector<2x16xf32>
    %451 = arith.negf %450 : vector<2x16xf32>
    %452 = math.exp %451 : vector<2x16xf32>
    %cst_111 = arith.constant 1.000000e+00 : f32
    %453 = vector.broadcast %cst_111 : f32 to vector<2x16xf32>
    %454 = arith.addf %453, %452 : vector<2x16xf32>
    %455 = arith.divf %453, %454 : vector<2x16xf32>
    %456 = vector.extract_strided_slice %437 {offsets = [0, 32], sizes = [2, 16], strides = [1, 1]} : vector<2x64xf32> to vector<2x16xf32>
    %457 = math.tanh %456 : vector<2x16xf32>
    %458 = vector.extract_strided_slice %437 {offsets = [0, 48], sizes = [2, 16], strides = [1, 1]} : vector<2x64xf32> to vector<2x16xf32>
    %459 = arith.negf %458 : vector<2x16xf32>
    %460 = math.exp %459 : vector<2x16xf32>
    %cst_112 = arith.constant 1.000000e+00 : f32
    %461 = vector.broadcast %cst_112 : f32 to vector<2x16xf32>
    %462 = arith.addf %461, %460 : vector<2x16xf32>
    %463 = arith.divf %461, %462 : vector<2x16xf32>
    %464 = arith.mulf %455, %395 : vector<2x16xf32>
    %465 = arith.mulf %449, %457 : vector<2x16xf32>
    %466 = arith.addf %464, %465 : vector<2x16xf32>
    %467 = math.tanh %466 : vector<2x16xf32>
    %468 = arith.mulf %463, %467 : vector<2x16xf32>
    %469 = vector.extract_strided_slice %443 {offsets = [0, 0], sizes = [2, 16], strides = [1, 1]} : vector<2x64xf32> to vector<2x16xf32>
    %470 = arith.negf %469 : vector<2x16xf32>
    %471 = math.exp %470 : vector<2x16xf32>
    %cst_113 = arith.constant 1.000000e+00 : f32
    %472 = vector.broadcast %cst_113 : f32 to vector<2x16xf32>
    %473 = arith.addf %472, %471 : vector<2x16xf32>
    %474 = arith.divf %472, %473 : vector<2x16xf32>
    %475 = vector.extract_strided_slice %443 {offsets = [0, 16], sizes = [2, 16], strides = [1, 1]} : vector<2x64xf32> to vector<2x16xf32>
    %476 = arith.negf %475 : vector<2x16xf32>
    %477 = math.exp %476 : vector<2x16xf32>
    %cst_114 = arith.constant 1.000000e+00 : f32
    %478 = vector.broadcast %cst_114 : f32 to vector<2x16xf32>
    %479 = arith.addf %478, %477 : vector<2x16xf32>
    %480 = arith.divf %478, %479 : vector<2x16xf32>
    %481 = vector.extract_strided_slice %443 {offsets = [0, 32], sizes = [2, 16], strides = [1, 1]} : vector<2x64xf32> to vector<2x16xf32>
    %482 = math.tanh %481 : vector<2x16xf32>
    %483 = vector.extract_strided_slice %443 {offsets = [0, 48], sizes = [2, 16], strides = [1, 1]} : vector<2x64xf32> to vector<2x16xf32>
    %484 = arith.negf %483 : vector<2x16xf32>
    %485 = math.exp %484 : vector<2x16xf32>
    %cst_115 = arith.constant 1.000000e+00 : f32
    %486 = vector.broadcast %cst_115 : f32 to vector<2x16xf32>
    %487 = arith.addf %486, %485 : vector<2x16xf32>
    %488 = arith.divf %486, %487 : vector<2x16xf32>
    %489 = arith.mulf %480, %420 : vector<2x16xf32>
    %490 = arith.mulf %474, %482 : vector<2x16xf32>
    %491 = arith.addf %489, %490 : vector<2x16xf32>
    %492 = math.tanh %491 : vector<2x16xf32>
    %493 = arith.mulf %488, %492 : vector<2x16xf32>
    %494 = arith.index_cast %c6_i32 : i32 to index
    %c0_116 = arith.constant 0 : index
    %c0_117 = arith.constant 0 : index
    %495 = vector.load %arg5[%494, %c0_116, %c0_117] : memref<8x2x32xf32, #tpu.memory_space<vmem>>, vector<1x2x16xf32>
    %496 = vector.shape_cast %495 : vector<1x2x16xf32> to vector<2x16xf32>
    %497 = vector.shape_cast %468 : vector<2x16xf32> to vector<1x2x16xf32>
    tpu.vector_store %arg5[%494, %c0_116, %c0_117], %497 {strides = array<i32>} : memref<8x2x32xf32, #tpu.memory_space<vmem>>, vector<1x2x16xf32>,
    %498 = arith.index_cast %431 : i32 to index
    %c0_118 = arith.constant 0 : index
    %c16_119 = arith.constant 16 : index
    %499 = vector.load %arg5[%498, %c0_118, %c16_119] : memref<8x2x32xf32, #tpu.memory_space<vmem>>, vector<1x2x16xf32>
    %500 = vector.shape_cast %499 : vector<1x2x16xf32> to vector<2x16xf32>
    %501 = vector.shape_cast %493 : vector<2x16xf32> to vector<1x2x16xf32>
    tpu.vector_store %arg5[%498, %c0_118, %c16_119], %501 {strides = array<i32>} : memref<8x2x32xf32, #tpu.memory_space<vmem>>, vector<1x2x16xf32>,
    %c7_i32_120 = arith.constant 7 : i32
    %c7_i32_121 = arith.constant 7 : i32
    %502 = arith.subi %c7_i32_121, %c7_i32_120 : i32
    %503 = arith.index_cast %c7_i32_120 : i32 to index
    %c0_122 = arith.constant 0 : index
    %c0_123 = arith.constant 0 : index
    %504 = vector.load %arg1[%503, %c0_122, %c0_123] : memref<8x2x64xf32, #tpu.memory_space<vmem>>, vector<1x2x64xf32>
    %505 = vector.shape_cast %504 : vector<1x2x64xf32> to vector<2x64xf32>
    %506 = arith.truncf %468 : vector<2x16xf32> to vector<2x16xbf16>
    %cst_124 = arith.constant dense<0.000000e+00> : vector<2x64xf32>
    %507 = tpu.matmul %506, %1, %cst_124 {dimension_numbers = #tpu.dot_dimension_numbers<[1], [0], [0], [1], [0, 0, 1, 1], [], []>} : vector<2x16xbf16>, vector<16x64xbf16>, vector<2x64xf32> -> vector<2x64xf32>
    %508 = arith.addf %505, %507 : vector<2x64xf32>
    %509 = arith.index_cast %502 : i32 to index
    %c0_125 = arith.constant 0 : index
    %c0_126 = arith.constant 0 : index
    %510 = vector.load %arg2[%509, %c0_125, %c0_126] : memref<8x2x64xf32, #tpu.memory_space<vmem>>, vector<1x2x64xf32>
    %511 = vector.shape_cast %510 : vector<1x2x64xf32> to vector<2x64xf32>
    %512 = arith.truncf %493 : vector<2x16xf32> to vector<2x16xbf16>
    %cst_127 = arith.constant dense<0.000000e+00> : vector<2x64xf32>
    %513 = tpu.matmul %512, %3, %cst_127 {dimension_numbers = #tpu.dot_dimension_numbers<[1], [0], [0], [1], [0, 0, 1, 1], [], []>} : vector<2x16xbf16>, vector<16x64xbf16>, vector<2x64xf32> -> vector<2x64xf32>
    %514 = arith.addf %511, %513 : vector<2x64xf32>
    %515 = vector.extract_strided_slice %508 {offsets = [0, 0], sizes = [2, 16], strides = [1, 1]} : vector<2x64xf32> to vector<2x16xf32>
    %516 = arith.negf %515 : vector<2x16xf32>
    %517 = math.exp %516 : vector<2x16xf32>
    %cst_128 = arith.constant 1.000000e+00 : f32
    %518 = vector.broadcast %cst_128 : f32 to vector<2x16xf32>
    %519 = arith.addf %518, %517 : vector<2x16xf32>
    %520 = arith.divf %518, %519 : vector<2x16xf32>
    %521 = vector.extract_strided_slice %508 {offsets = [0, 16], sizes = [2, 16], strides = [1, 1]} : vector<2x64xf32> to vector<2x16xf32>
    %522 = arith.negf %521 : vector<2x16xf32>
    %523 = math.exp %522 : vector<2x16xf32>
    %cst_129 = arith.constant 1.000000e+00 : f32
    %524 = vector.broadcast %cst_129 : f32 to vector<2x16xf32>
    %525 = arith.addf %524, %523 : vector<2x16xf32>
    %526 = arith.divf %524, %525 : vector<2x16xf32>
    %527 = vector.extract_strided_slice %508 {offsets = [0, 32], sizes = [2, 16], strides = [1, 1]} : vector<2x64xf32> to vector<2x16xf32>
    %528 = math.tanh %527 : vector<2x16xf32>
    %529 = vector.extract_strided_slice %508 {offsets = [0, 48], sizes = [2, 16], strides = [1, 1]} : vector<2x64xf32> to vector<2x16xf32>
    %530 = arith.negf %529 : vector<2x16xf32>
    %531 = math.exp %530 : vector<2x16xf32>
    %cst_130 = arith.constant 1.000000e+00 : f32
    %532 = vector.broadcast %cst_130 : f32 to vector<2x16xf32>
    %533 = arith.addf %532, %531 : vector<2x16xf32>
    %534 = arith.divf %532, %533 : vector<2x16xf32>
    %535 = arith.mulf %526, %466 : vector<2x16xf32>
    %536 = arith.mulf %520, %528 : vector<2x16xf32>
    %537 = arith.addf %535, %536 : vector<2x16xf32>
    %538 = math.tanh %537 : vector<2x16xf32>
    %539 = arith.mulf %534, %538 : vector<2x16xf32>
    %540 = vector.extract_strided_slice %514 {offsets = [0, 0], sizes = [2, 16], strides = [1, 1]} : vector<2x64xf32> to vector<2x16xf32>
    %541 = arith.negf %540 : vector<2x16xf32>
    %542 = math.exp %541 : vector<2x16xf32>
    %cst_131 = arith.constant 1.000000e+00 : f32
    %543 = vector.broadcast %cst_131 : f32 to vector<2x16xf32>
    %544 = arith.addf %543, %542 : vector<2x16xf32>
    %545 = arith.divf %543, %544 : vector<2x16xf32>
    %546 = vector.extract_strided_slice %514 {offsets = [0, 16], sizes = [2, 16], strides = [1, 1]} : vector<2x64xf32> to vector<2x16xf32>
    %547 = arith.negf %546 : vector<2x16xf32>
    %548 = math.exp %547 : vector<2x16xf32>
    %cst_132 = arith.constant 1.000000e+00 : f32
    %549 = vector.broadcast %cst_132 : f32 to vector<2x16xf32>
    %550 = arith.addf %549, %548 : vector<2x16xf32>
    %551 = arith.divf %549, %550 : vector<2x16xf32>
    %552 = vector.extract_strided_slice %514 {offsets = [0, 32], sizes = [2, 16], strides = [1, 1]} : vector<2x64xf32> to vector<2x16xf32>
    %553 = math.tanh %552 : vector<2x16xf32>
    %554 = vector.extract_strided_slice %514 {offsets = [0, 48], sizes = [2, 16], strides = [1, 1]} : vector<2x64xf32> to vector<2x16xf32>
    %555 = arith.negf %554 : vector<2x16xf32>
    %556 = math.exp %555 : vector<2x16xf32>
    %cst_133 = arith.constant 1.000000e+00 : f32
    %557 = vector.broadcast %cst_133 : f32 to vector<2x16xf32>
    %558 = arith.addf %557, %556 : vector<2x16xf32>
    %559 = arith.divf %557, %558 : vector<2x16xf32>
    %560 = arith.mulf %551, %491 : vector<2x16xf32>
    %561 = arith.mulf %545, %553 : vector<2x16xf32>
    %562 = arith.addf %560, %561 : vector<2x16xf32>
    %563 = math.tanh %562 : vector<2x16xf32>
    %564 = arith.mulf %559, %563 : vector<2x16xf32>
    %565 = arith.index_cast %c7_i32_120 : i32 to index
    %c0_134 = arith.constant 0 : index
    %c0_135 = arith.constant 0 : index
    %566 = vector.load %arg5[%565, %c0_134, %c0_135] : memref<8x2x32xf32, #tpu.memory_space<vmem>>, vector<1x2x16xf32>
    %567 = vector.shape_cast %566 : vector<1x2x16xf32> to vector<2x16xf32>
    %568 = vector.shape_cast %539 : vector<2x16xf32> to vector<1x2x16xf32>
    tpu.vector_store %arg5[%565, %c0_134, %c0_135], %568 {strides = array<i32>} : memref<8x2x32xf32, #tpu.memory_space<vmem>>, vector<1x2x16xf32>,
    %569 = arith.index_cast %502 : i32 to index
    %c0_136 = arith.constant 0 : index
    %c16_137 = arith.constant 16 : index
    %570 = vector.load %arg5[%569, %c0_136, %c16_137] : memref<8x2x32xf32, #tpu.memory_space<vmem>>, vector<1x2x16xf32>
    %571 = vector.shape_cast %570 : vector<1x2x16xf32> to vector<2x16xf32>
    %572 = vector.shape_cast %564 : vector<2x16xf32> to vector<1x2x16xf32>
    tpu.vector_store %arg5[%569, %c0_136, %c16_137], %572 {strides = array<i32>} : memref<8x2x32xf32, #tpu.memory_space<vmem>>, vector<1x2x16xf32>,
    %c8_i32 = arith.constant 8 : i32
    return
  }
  func.func @transform_0(%arg0: i32) -> (i32, i32, i32) {
    %c0_i32 = arith.constant 0 : i32
    %c0_i32_0 = arith.constant 0 : i32
    %c0_i32_1 = arith.constant 0 : i32
    return %c0_i32, %arg0, %c0_i32_0 : i32, i32, i32
  }
  func.func @transform_1(%arg0: i32) -> (i32, i32, i32) {
    %c0_i32 = arith.constant 0 : i32
    %c0_i32_0 = arith.constant 0 : i32
    %c0_i32_1 = arith.constant 0 : i32
    return %c0_i32, %arg0, %c0_i32_0 : i32, i32, i32
  }
  func.func @transform_2(%arg0: i32) -> (i32, i32) {
    %c0_i32 = arith.constant 0 : i32
    %c0_i32_0 = arith.constant 0 : i32
    %c0_i32_1 = arith.constant 0 : i32
    return %c0_i32, %c0_i32_0 : i32, i32
  }
  func.func @transform_3(%arg0: i32) -> (i32, i32) {
    %c0_i32 = arith.constant 0 : i32
    %c0_i32_0 = arith.constant 0 : i32
    %c0_i32_1 = arith.constant 0 : i32
    return %c0_i32, %c0_i32_0 : i32, i32
  }
  func.func @transform_4(%arg0: i32) -> (i32, i32, i32) {
    %c0_i32 = arith.constant 0 : i32
    %c0_i32_0 = arith.constant 0 : i32
    %c0_i32_1 = arith.constant 0 : i32
    return %c0_i32, %arg0, %c0_i32_0 : i32, i32, i32
  }
}

module attributes {stable_mosaic.version = 11 : i64} {
  func.func @kernel(%arg0: i32, %arg1: i32, %arg2: memref<40x8xbf16, #tpu.memory_space<vmem>>, %arg3: memref<40x8xbf16, #tpu.memory_space<vmem>>, %arg4: memref<1x8x32xf32, #tpu.memory_space<vmem>>, %arg5: memref<1x8x32xf32, #tpu.memory_space<vmem>>, %arg6: memref<40x32xf32, #tpu.memory_space<vmem>>, %arg7: memref<32x20xf32, #tpu.memory_space<vmem>>, %arg8: memref<1x20xf32, #tpu.memory_space<vmem>>, %arg9: memref<1x40x20xf32, #tpu.memory_space<vmem>>) attributes {dimension_semantics = [#tpu.dimension_semantics<parallel>, #tpu.dimension_semantics<parallel>], iteration_bounds = array<i64: 2, 1>, scalar_prefetch = 0 : i64, scratch_operands = 0 : i64, tpu.core_type = #tpu.core_type<tc>, window_params = [{transform_indices = @transform_0, window_bounds = array<i64: 40, 8>}, {transform_indices = @transform_1, window_bounds = array<i64: 40, 8>}, {transform_indices = @transform_2, window_bounds = array<i64: 1, 8, 32>}, {transform_indices = @transform_3, window_bounds = array<i64: 1, 8, 32>}, {transform_indices = @transform_4, window_bounds = array<i64: 40, 32>}, {pipeline_mode = #tpu.pipeline_mode<synchronous>, transform_indices = @transform_5, window_bounds = array<i64: 32, 20>}, {pipeline_mode = #tpu.pipeline_mode<synchronous>, transform_indices = @transform_6, window_bounds = array<i64: 1, 20>}, {transform_indices = @transform_7, window_bounds = array<i64: 1, 40, 20>}]} {
    %c0 = arith.constant 0 : index
    %c0_0 = arith.constant 0 : index
    %0 = vector.load %arg2[%c0, %c0_0] : memref<40x8xbf16, #tpu.memory_space<vmem>>, vector<40x8xbf16>
    %c0_1 = arith.constant 0 : index
    %c0_2 = arith.constant 0 : index
    %c0_3 = arith.constant 0 : index
    %1 = vector.load %arg4[%c0_1, %c0_2, %c0_3] : memref<1x8x32xf32, #tpu.memory_space<vmem>>, vector<1x8x32xf32>
    %2 = vector.shape_cast %1 : vector<1x8x32xf32> to vector<8x32xf32>
    %3 = arith.truncf %2 : vector<8x32xf32> to vector<8x32xbf16>
    %cst = arith.constant dense<0.000000e+00> : vector<40x32xf32>
    %4 = tpu.matmul %0, %3, %cst {dimension_numbers = #tpu.dot_dimension_numbers<[1], [0], [0], [1], [0, 0, 1, 1], [], []>} : vector<40x8xbf16>, vector<8x32xbf16>, vector<40x32xf32> -> vector<40x32xf32>
    %c0_4 = arith.constant 0 : index
    %c0_5 = arith.constant 0 : index
    %5 = vector.load %arg3[%c0_4, %c0_5] : memref<40x8xbf16, #tpu.memory_space<vmem>>, vector<40x8xbf16>
    %c0_6 = arith.constant 0 : index
    %c0_7 = arith.constant 0 : index
    %c0_8 = arith.constant 0 : index
    %6 = vector.load %arg5[%c0_6, %c0_7, %c0_8] : memref<1x8x32xf32, #tpu.memory_space<vmem>>, vector<1x8x32xf32>
    %7 = vector.shape_cast %6 : vector<1x8x32xf32> to vector<8x32xf32>
    %8 = arith.truncf %7 : vector<8x32xf32> to vector<8x32xbf16>
    %cst_9 = arith.constant dense<0.000000e+00> : vector<40x32xf32>
    %9 = tpu.matmul %5, %8, %cst_9 {dimension_numbers = #tpu.dot_dimension_numbers<[1], [0], [0], [1], [0, 0, 1, 1], [], []>} : vector<40x8xbf16>, vector<8x32xbf16>, vector<40x32xf32> -> vector<40x32xf32>
    %10 = arith.addf %4, %9 : vector<40x32xf32>
    %11 = math.tanh %10 : vector<40x32xf32>
    %c0_10 = arith.constant 0 : index
    %c0_11 = arith.constant 0 : index
    %12 = vector.load %arg7[%c0_10, %c0_11] : memref<32x20xf32, #tpu.memory_space<vmem>>, vector<32x20xf32>
    %13 = arith.truncf %12 : vector<32x20xf32> to vector<32x20xbf16>
    %c0_12 = arith.constant 0 : index
    %c0_13 = arith.constant 0 : index
    %14 = vector.load %arg8[%c0_12, %c0_13] : memref<1x20xf32, #tpu.memory_space<vmem>>, vector<1x20xf32>
    %c0_14 = arith.constant 0 : index
    %c0_15 = arith.constant 0 : index
    %15 = vector.load %arg6[%c0_14, %c0_15] : memref<40x32xf32, #tpu.memory_space<vmem>>, vector<40x32xf32>
    %16 = arith.addf %11, %15 : vector<40x32xf32>
    %17 = arith.truncf %16 : vector<40x32xf32> to vector<40x32xbf16>
    %cst_16 = arith.constant dense<0.000000e+00> : vector<40x20xf32>
    %18 = tpu.matmul %17, %13, %cst_16 {dimension_numbers = #tpu.dot_dimension_numbers<[1], [0], [0], [1], [0, 0, 1, 1], [], []>} : vector<40x32xbf16>, vector<32x20xbf16>, vector<40x20xf32> -> vector<40x20xf32>
    %19 = vector.broadcast %14 : vector<1x20xf32> to vector<40x20xf32>
    %20 = arith.addf %18, %19 : vector<40x20xf32>
    %c0_17 = arith.constant 0 : index
    %c0_18 = arith.constant 0 : index
    %c0_19 = arith.constant 0 : index
    %21 = vector.load %arg9[%c0_17, %c0_18, %c0_19] : memref<1x40x20xf32, #tpu.memory_space<vmem>>, vector<1x40x20xf32>
    %22 = vector.shape_cast %21 : vector<1x40x20xf32> to vector<40x20xf32>
    %23 = vector.shape_cast %20 : vector<40x20xf32> to vector<1x40x20xf32>
    tpu.vector_store %arg9[%c0_17, %c0_18, %c0_19], %23 {strides = array<i32>} : memref<1x40x20xf32, #tpu.memory_space<vmem>>, vector<1x40x20xf32>,
    return
  }
  func.func @transform_0(%arg0: i32, %arg1: i32) -> (i32, i32) {
    %c0_i32 = arith.constant 0 : i32
    %c0_i32_0 = arith.constant 0 : i32
    return %arg1, %c0_i32 : i32, i32
  }
  func.func @transform_1(%arg0: i32, %arg1: i32) -> (i32, i32) {
    %c0_i32 = arith.constant 0 : i32
    %c0_i32_0 = arith.constant 0 : i32
    return %arg1, %c0_i32 : i32, i32
  }
  func.func @transform_2(%arg0: i32, %arg1: i32) -> (i32, i32, i32) {
    %c0_i32 = arith.constant 0 : i32
    %c0_i32_0 = arith.constant 0 : i32
    %c0_i32_1 = arith.constant 0 : i32
    return %arg0, %c0_i32, %c0_i32_0 : i32, i32, i32
  }
  func.func @transform_3(%arg0: i32, %arg1: i32) -> (i32, i32, i32) {
    %c0_i32 = arith.constant 0 : i32
    %c0_i32_0 = arith.constant 0 : i32
    %c0_i32_1 = arith.constant 0 : i32
    return %arg0, %c0_i32, %c0_i32_0 : i32, i32, i32
  }
  func.func @transform_4(%arg0: i32, %arg1: i32) -> (i32, i32) {
    %c0_i32 = arith.constant 0 : i32
    %c0_i32_0 = arith.constant 0 : i32
    return %arg1, %c0_i32 : i32, i32
  }
  func.func @transform_5(%arg0: i32, %arg1: i32) -> (i32, i32) {
    %c0_i32 = arith.constant 0 : i32
    %c0_i32_0 = arith.constant 0 : i32
    %c0_i32_1 = arith.constant 0 : i32
    return %c0_i32, %c0_i32_0 : i32, i32
  }
  func.func @transform_6(%arg0: i32, %arg1: i32) -> (i32, i32) {
    %c0_i32 = arith.constant 0 : i32
    %c0_i32_0 = arith.constant 0 : i32
    %c0_i32_1 = arith.constant 0 : i32
    return %c0_i32, %c0_i32_0 : i32, i32
  }
  func.func @transform_7(%arg0: i32, %arg1: i32) -> (i32, i32, i32) {
    %c0_i32 = arith.constant 0 : i32
    %c0_i32_0 = arith.constant 0 : i32
    return %arg0, %arg1, %c0_i32 : i32, i32, i32
  }
}

</mosaic_0001>

<bundles_post_ra>
// kernel: _lambda_.10
= control target key start
LH: loop header
LB: loop body
LE: loop exit
PB: predicated region body
PF: predicated region fallthrough
CT: control target
= control target key end

     0   :  { %vm28_vm0 = vcmask 261120   ;;  %vm46_vm1 = vcmask 523264   ;;  %s102_s1 = inlined_call_operand.vmem [shape: f32[32,64], index: 1, kind: input, shape index: {}]   ;;  %s103_s0 = inlined_call_operand.vmem [shape: f32[16,32], index: 0, kind: input, shape index: {}]   ;;  %s104_s2 = inlined_call_operand.vmem [shape: f32[1,64], index: 2, kind: input, shape index: {}]   ;;  %s105_s3 = inlined_call_operand.vmem [shape: f32[16,64], index: 3, kind: output, shape index: {}]  }
   0x1   :  { %v20_v0 = vld [vmem:[%s102_s1 + $0x10] sm:$0xff]  ;;  %v21_v1 = vld [vmem:[%s102_s1 + $0x18] sm:$0xff]  ;;  %v18_v2 = vld [vmem:[%s102_s1] sm:$0xff] }
   0x2   :  { %v23_v3 = vpack.c.bf16 %v21_v1, %v20_v0  ;;  %v19_v4 = vld [vmem:[%s102_s1 + $0x8] sm:$0xff]  ;;  %v15_v6 = vld [vmem:[%s103_s0] sm:$0xff] }
   0x3   :  { %v22_v5 = vpack.c.bf16 %v19_v4, %v18_v2  ;;  %v16_v7 = vld [vmem:[%s103_s0 + $0x8] sm:$0xff]  ;;  %v54_v9 = vld [vmem:[%s104_s2] ss:$0 sm:$0xff] }
   0x4   :  { %38 = vmatpush.bf16.msra.mxu0 %v23_v3  ;;  %v17_v8 = vpack.c.bf16 %v16_v7, %v15_v6 }
   0x8   :  { %39 = vmatpush.bf16.msra.mxu0 %v22_v5 }
   0xb   :  { %53 = vmatmul.msk.bf16.vlgmr.msra.gmra.mxu0 %vm28_vm0, %v17_v8 }
  0x88   :  { %v41_v10 = vpop.f32.mrf.mxu0 }
  0x89   :  { %v42_v11 = vadd.f32 %v54_v9, %v41_v10 }
  0x8b   :  { %47 = vst.msk [vmem:[%s105_s3] sm:$0xff] %vm46_vm1, %v42_v11 }
  0x90   :  { %v43_v12 = vpop.f32.mrf.mxu0 }
  0x91   :  { %v44_v13 = vadd.f32 %v54_v9, %v43_v12 }
  0x93   :  { %48 = vst.msk [vmem:[%s105_s3 + $0x8] sm:$0xff] %vm46_vm1, %v44_v13 }

// kernel: _lambda_.6
= control target key start
LH: loop header
LB: loop body
LE: loop exit
PB: predicated region body
PF: predicated region fallthrough
CT: control target
= control target key end

     0   :  { %vm36_vm0 = vcmask 261120   ;;  %vm54_vm1 = vcmask 523264   ;;  %s178_s1 = inlined_call_operand.vmem [shape: f32[32,64], index: 1, kind: input, shape index: {}]   ;;  %s179_s3 = inlined_call_operand.vmem [shape: f32[32,64], index: 3, kind: input, shape index: {}]   ;;  %s180_s0 = inlined_call_operand.vmem [shape: f32[16,32], index: 0, kind: input, shape index: {}]   ;;  %s181_s2 = inlined_call_operand.vmem [shape: f32[1,64], index: 2, kind: input, shape index: {}]   ;;  %s182_s4 = inlined_call_operand.vmem [shape: f32[1,64], index: 4, kind: input, shape index: {}]   ;;  %s183_s5 = inlined_call_operand.vmem [shape: f32[16,64], index: 5, kind: output, shape index: {0}]   ;;  %s184_s6 = inlined_call_operand.vmem [shape: f32[16,64], index: 6, kind: output, shape index: {1}]  }
   0x1   :  { %v28_v0 = vld [vmem:[%s178_s1 + $0x10] sm:$0xff]  ;;  %v29_v1 = vld [vmem:[%s178_s1 + $0x18] sm:$0xff]  ;;  %v26_v5 = vld [vmem:[%s178_s1] sm:$0xff] }
   0x2   :  { %v59_v2 = vld [vmem:[%s179_s3 + $0x10] sm:$0xff]  ;;  %v31_v3 = vpack.c.bf16 %v29_v1, %v28_v0  ;;  %v60_v4 = vld [vmem:[%s179_s3 + $0x18] sm:$0xff]  ;;  %v27_v6 = vld [vmem:[%s178_s1 + $0x8] sm:$0xff] }
   0x3   :  { %v62_v7 = vpack.c.bf16 %v60_v4, %v59_v2  ;;  %v57_v8 = vld [vmem:[%s179_s3] sm:$0xff]  ;;  %v58_v9 = vld [vmem:[%s179_s3 + $0x8] sm:$0xff]  ;;  %v30_v10 = vpack.c.bf16 %v27_v6, %v26_v5 }
   0x4   :  { %46 = vmatpush.bf16.msra.mxu0 %v31_v3  ;;  %v23_v11 = vld [vmem:[%s180_s0] sm:$0xff]  ;;  %v24_v12 = vld [vmem:[%s180_s0 + $0x8] sm:$0xff]  ;;  %v61_v13 = vpack.c.bf16 %v58_v9, %v57_v8 }
   0x5   :  { %73 = vmatpush.bf16.msra.mxu1 %v62_v7  ;;  %v25_v14 = vpack.c.bf16 %v24_v12, %v23_v11  ;;  %v93_v15 = vld [vmem:[%s181_s2] ss:$0 sm:$0xff] }
   0x6   :  { %v94_v16 = vld [vmem:[%s182_s4] ss:$0 sm:$0xff] }
   0x8   :  { %47 = vmatpush.bf16.msra.mxu0 %v30_v10 }
   0x9   :  { %74 = vmatpush.bf16.msra.mxu1 %v61_v13 }
   0xb   :  { %91 = vmatmul.msk.bf16.vlgmr.msra.gmra.mxu0 %vm36_vm0, %v25_v14 }
   0xc   :  { %92 = vmatmul.msk.bf16.vlgmr.msra.gmra.mxu1 %vm36_vm0, %v25_v14 }
  0x88   :  { %v49_v17 = vpop.f32.mrf.mxu0 }
  0x89   :  { %v50_v18 = vadd.f32 %v93_v15, %v49_v17  ;;  %v76_v19 = vpop.f32.mrf.mxu1 }
  0x8a   :  { %v77_v20 = vadd.f32 %v94_v16, %v76_v19 }
  0x8b   :  { %55 = vst.msk [vmem:[%s183_s5] sm:$0xff] %vm54_vm1, %v50_v18 }
  0x8c   :  { %81 = vst.msk [vmem:[%s184_s6] sm:$0xff] %vm54_vm1, %v77_v20 }
  0x90   :  { %v51_v21 = vpop.f32.mrf.mxu0 }
  0x91   :  { %v52_v22 = vadd.f32 %v93_v15, %v51_v21  ;;  %v78_v23 = vpop.f32.mrf.mxu1 }
  0x92   :  { %v79_v24 = vadd.f32 %v94_v16, %v78_v23 }
  0x93   :  { %56 = vst.msk [vmem:[%s183_s5 + $0x8] sm:$0xff] %vm54_vm1, %v52_v22 }
  0x94   :  { %82 = vst.msk [vmem:[%s184_s6 + $0x8] sm:$0xff] %vm54_vm1, %v79_v24 }

// kernel: _lambda_.11
= control target key start
LH: loop header
LB: loop body
LE: loop exit
PB: predicated region body
PF: predicated region fallthrough
CT: control target
= control target key end

     0   :  { %s844_s24 = smov 0   ;;  %s846_s25 = smov 0   ;;  %s935_s0 = inlined_call_operand.vmem [shape: bf16[40,8], index: 0, kind: input, shape index: {}]   ;;  %s936_s1 = inlined_call_operand.vmem [shape: bf16[40,8], index: 1, kind: input, shape index: {}]   ;;  %s937_s2 = inlined_call_operand.vmem [shape: f32[2,8,32], index: 2, kind: input, shape index: {}]   ;;  %s938_s3 = inlined_call_operand.vmem [shape: f32[2,8,32], index: 3, kind: input, shape index: {}]   ;;  %s939_s4 = inlined_call_operand.vmem [shape: f32[40,32], index: 4, kind: input, shape index: {}]   ;;  %s940_s5 = inlined_call_operand.vmem [shape: f32[32,20], index: 5, kind: input, shape index: {}]   ;;  %s941_s6 = inlined_call_operand.vmem [shape: f32[1,20], index: 6, kind: input, shape index: {}]   ;;  %s942_s7 = inlined_call_operand.vmem [shape: f32[2,40,20], index: 7, kind: output, shape index: {}]  }
   0x1   :  { %s848_s26 = smov 0  }
   0x2 LB: > { %s29_s27 = sadd.s32 1, %s798_s25  ;;  %p707_p0 = scmp.ge.s32.totalorder %s802_s26, 1  ;;  %s802_s26 = sphi %s848_s26, %s17_s26   ;;  %s798_s25 = sphi %s846_s25, %s944_s25   ;;  %s794_s24 = sphi %s844_s24, %s943_s24  }
   0x3   : > { %p31_p1 = scmp.ge.s32.totalorder %s29_s27, 2  ;;  %p292_p2 = scmp.lt.s32.totalorder %s802_s26, 3 }
   0x5   : > { %s946_s27 = smov (%p31_p1, %s29_s27), 0  ;;  %p293_p3 = pnand %p707_p0, %p292_p2 }
   0x6   : > { %p358_p4 = scmp.lt.s32.totalorder (!%p293_p3), %s794_s24, 1 }
   0x7   : > { %296 = sbr.rel (%p293_p3) target bundleno = 342 (0x156), region = 48 }
   0xc   : > { %s948_s24 = smov (!%p358_p4, %s794_s24), 1  ;;  %vm420_vm0 = vcmask 1043456   ;;  %v740_v6 = vld [vmem:[%s936_s1] sm:$0xff]  ;;  %vm410_vm1 = vcmask 64512   ;;  %v741_v8 = vld [vmem:[%s936_s1 + $0x8] sm:$0xff]  ;;  %v502_v16 = vld [vmem:[%s940_s5 + $0x10] sm:$0xff] }
   0xd   : > { %s708_s28 = sshll.u32 %s948_s24, 3  ;;  %v738_v7 = vld [vmem:[%s935_s0] sm:$0xff]  ;;  %v739_v9 = vld [vmem:[%s935_s0 + $0x8] sm:$0xff]  ;;  %v394_v10 = vld [vmem:[%s936_s1 + $0x10] sm:$0xf]  ;;  %vm523_vm2 = vcmask 261120  }
   0xe   : > { %s365_s8 = scalar_lea.vmem %s938_s3, %s708_s28  ;;  %s361_s11 = scalar_lea.vmem %s937_s2, %s708_s28  ;;  %v387_v11 = vld [vmem:[%s935_s0 + $0x10] sm:$0xf]  ;;  %v406_v12 = vunpack.c.l.b16 %v394_v10  ;;  %v503_v17 = vld [vmem:[%s940_s5 + $0x18] sm:$0xff]  ;;  %v500_v19 = vld [vmem:[%s940_s5] sm:$0xff]  ;;  %vm556_vm3 = vcmask 162816  }
   0xf   : > { %v395_v0 = vld [vmem:[%s365_s8] sm:$0xff]  ;;  %v456_v13 = vunpack.c.l.b16 %v387_v11  ;;  %v505_v18 = vpack.c.bf16 %v503_v17, %v502_v16  ;;  %v501_v20 = vld [vmem:[%s940_s5 + $0x8] sm:$0xff]  ;;  %v509_v42 = vld [vmem:[%s939_s4 + $0x10] sm:$0xff]  ;;  %s744_s23 = smul.u32 40, %s948_s24 }
  0x10   : > { %v388_v1 = vld [vmem:[%s361_s11] sm:$0xff]  ;;  %v396_v2 = vpack.c.bf16 %v395_v0, %v395_v0  ;;  %v409_v14 = vpack.c.b16 %v406_v12, %v406_v12  ;;  %v504_v21 = vpack.c.bf16 %v501_v20, %v500_v19  ;;  %v508_v30 = vld [vmem:[%s939_s4 + $0x8] sm:$0xff]  ;;  %v510_v43 = vld [vmem:[%s939_s4 + $0x18] sm:$0xff] }
  0x11   : > { %v389_v3 = vpack.c.bf16 %v388_v1, %v388_v1  ;;  %v459_v15 = vpack.c.b16 %v456_v13, %v456_v13  ;;  %539 = vmatpush.bf16.msra.mxu2 %v505_v18  ;;  %742 = vmatpush.bf16.msra.mxu3 %v505_v18  ;;  %v507_v29 = vld [vmem:[%s939_s4] sm:$0xff]  ;;  %s380_s9 = scalar_lea.vmem %s942_s7, %s744_s23 }
  0x12   : > { %v422_v4 = vsel %vm420_vm0, %v396_v2, 0  ;;  %v511_v54 = vld [vmem:[%s939_s4 + $0x20] sm:$0xff] }
  0x13   : > { %v470_v5 = vsel %vm420_vm0, %v389_v3, 0  ;;  %431 = vmatpush.bf16.msra.mxu0 %v422_v4  ;;  %v769_v57 = vld [vmem:[%s941_s6] ss:$0 sm:$0xff] }
  0x14   : > { %479 = vmatpush.bf16.msra.mxu1 %v470_v5 }
  0x15   : > { %540 = vmatpush.bf16.msra.mxu2 %v504_v21  ;;  %743 = vmatpush.bf16.msra.mxu3 %v504_v21 }
  0x16   : > { %719 = vmatmul.msk.bf16.vlgmr.msra.gmra.mxu0 %vm410_vm1, %v740_v6 }
  0x17   : > { %730 = vmatmul.msk.bf16.vlgmr.msra.gmra.mxu1 %vm410_vm1, %v738_v7 }
  0x26   : > { %720 = vmatmul.msk.bf16.gmra.mxu0 %vm410_vm1, %v741_v8 }
  0x27   : > { %731 = vmatmul.msk.bf16.gmra.mxu1 %vm410_vm1, %v739_v9 }
  0x36   : > { %721 = vmatmul.msk.bf16.gmra.mxu0 %vm410_vm1, %v409_v14 }
  0x37   : > { %732 = vmatmul.msk.bf16.gmra.mxu1 %vm410_vm1, %v459_v15 }
  0x93   : > { %v433_v22 = vpop.f32.mrf.mxu0 }
  0x94   : > { %v481_v23 = vpop.f32.mrf.mxu1 }
  0x95   : > { %v482_v24 = vadd.f32 %v481_v23, %v433_v22 }
  0x97   : > { %770 = vtanh.f32 %v482_v24 }
  0x9b   : > { %v435_v25 = vpop.f32.mrf.mxu0 }
  0x9c   : > { %v483_v26 = vpop.f32.mrf.mxu1 }
  0x9d   : > { %v484_v27 = vadd.f32 %v483_v26, %v435_v25  ;;  %v771_v28 = vpop.eup %770 }
  0x9e   : > { %v512_v34 = vadd.f32 %v771_v28, %v507_v29 }
  0x9f   : > { %772 = vtanh.f32 %v484_v27 }
  0xa3   : > { %v438_v31 = vpop.f32.mrf.mxu0 }
  0xa4   : > { %v486_v32 = vpop.f32.mrf.mxu1 }
  0xa5   : > { %v773_v33 = vpop.eup %772  ;;  %v487_v37 = vadd.f32 %v486_v32, %v438_v31 }
  0xa6   : > { %v513_v35 = vadd.f32 %v773_v33, %v508_v30 }
  0xa7   : > { %774 = vtanh.f32 %v487_v37 }
  0xa8   : > { %v517_v36 = vpack.c.bf16 %v513_v35, %v512_v34 }
  0xaa   : > { %733 = vmatmul.msk.bf16.vlgmr.msra.gmra.mxu2 %vm523_vm2, %v517_v36 }
  0xab   : > { %v440_v38 = vpop.f32.mrf.mxu0 }
  0xac   : > { %v488_v39 = vpop.f32.mrf.mxu1 }
  0xad   : > { %v489_v40 = vadd.f32 %v488_v39, %v440_v38  ;;  %v775_v41 = vpop.eup %774 }
  0xae   : > { %v514_v48 = vadd.f32 %v775_v41, %v509_v42 }
  0xaf   : > { %776 = vtanh.f32 %v489_v40 }
  0xb3   : > { %v443_v44 = vpop.f32.mrf.mxu0 }
  0xb4   : > { %v491_v45 = vpop.f32.mrf.mxu1 }
  0xb5   : > { %v777_v46 = vpop.eup %776  ;;  %v492_v47 = vadd.f32 %v491_v45, %v443_v44 }
  0xb6   : > { %v515_v49 = vadd.f32 %v777_v46, %v510_v43 }
  0xb7   : > { %778 = vtanh.f32 %v492_v47 }
  0xb8   : > { %v518_v50 = vpack.c.bf16 %v515_v49, %v514_v48 }
  0xba   : > { %734 = vmatmul.msk.bf16.vlgmr.msra.gmra.mxu3 %vm523_vm2, %v518_v50 }
  0xbb   : > { %v445_v51 = vpop.f32.mrf.mxu0 }
  0xbc   : > { %v493_v52 = vpop.f32.mrf.mxu1 }
  0xbd   : > { %v779_v53 = vpop.eup %778 }
  0xbe   : > { %v516_v55 = vadd.f32 %v779_v53, %v511_v54 }
  0xc0   : > { %v519_v56 = vpack.c.bf16 %v516_v55, %v516_v55 }
  0xca   : > { %735 = vmatmul.msk.bf16.gmra.mxu3 %vm523_vm2, %v519_v56 }
 0x12d   : > { %v542_v58 = vpop.f32.mrf.mxu2 }
 0x12e   : > { %v543_v59 = vadd.f32 %v769_v57, %v542_v58 }
 0x130   : > { %557 = vst.msk [vmem:[%s380_s9] sm:$0xff] %vm556_vm3, %v543_v59 }
 0x135   : > { %v544_v60 = vpop.f32.mrf.mxu2 }
 0x136   : > { %v545_v61 = vadd.f32 %v769_v57, %v544_v60 }
 0x138   : > { %558 = vst.msk [vmem:[%s380_s9 + $0x8] sm:$0xff] %vm556_vm3, %v545_v61 }
 0x13d   : > { %v547_v62 = vpop.f32.mrf.mxu3 }
 0x13e   : > { %v548_v63 = vadd.f32 %v769_v57, %v547_v62 }
 0x140   : > { %559 = vst.msk [vmem:[%s380_s9 + $0x10] sm:$0xff] %vm556_vm3, %v548_v63 }
 0x145   : > { %v549_v0 = vpop.f32.mrf.mxu3 }
 0x146   : > { %v550_v1 = vadd.f32 %v769_v57, %v549_v0 }
 0x148   : > { %560 = vst.msk [vmem:[%s380_s9 + $0x18] sm:$0xff] %vm556_vm3, %v550_v1 }
 0x14d   : > { %v552_v2 = vpop.f32.mrf.mxu3 }
 0x14e   : > { %v553_v3 = vadd.f32 %v769_v57, %v552_v2 }
 0x150   : > { %561 = vst.msk [vmem:[%s380_s9 + $0x20] sm:$0xff] %vm556_vm3, %v553_v3 }
 0x155   : > { %v554_v4 = vpop.f32.mrf.mxu3 }
 0x156 PF: > { %s17_s26 = sadd.s32 1, %s802_s26   ;;  %s943_s24 = smov %s798_s25 }
 0x157   : > { %p14_p5 = scmp.ge.s32.totalorder %s17_s26, 4   ;;  %s944_s25 = smov %s946_s27 }
 0x159   :  { %16 = sbr.rel (!%p14_p5) target bundleno = 2 (0x2), region = 90 }

// kernel: _lambda_.7
= control target key start
LH: loop header
LB: loop body
LE: loop exit
PB: predicated region body
PF: predicated region fallthrough
CT: control target
= control target key end

     0   :  { %v1256_v6 = vmov 0   ;;  %s1257_s25 = smov 96   ;;  %s1258_s26 = smov 16   ;;  %vm25_vm8 = vcmask 130048   ;;  %s1648_s2 = inlined_call_operand.vmem [shape: f32[16,64], index: 2, kind: input, shape index: {}]   ;;  %s1649_s3 = inlined_call_operand.vmem [shape: f32[16,64], index: 3, kind: input, shape index: {}]   ;;  %s1650_s0 = inlined_call_operand.vmem [shape: f32[8,2,64], index: 0, kind: input, shape index: {}]   ;;  %s1651_s1 = inlined_call_operand.vmem [shape: f32[8,2,64], index: 1, kind: input, shape index: {}]   ;;  %s1652_s4 = inlined_call_operand.vmem [shape: f32[8,2,32], index: 4, kind: output, shape index: {}]  }
   0x1   :  { %v18_v0 = vld [vmem:[%s1648_s2] sm:$0xff]  ;;  %v19_v1 = vld [vmem:[%s1648_s2 + $0x8] sm:$0xff]  ;;  %s1259_s27 = smov 32   ;;  %s1260_s28 = smov 80  }
   0x2   :  { %v21_v2 = vld [vmem:[%s1649_s3] sm:$0xff]  ;;  %v1295_v3 = vpack.c.bf16 %v19_v1, %v18_v0  ;;  %v22_v4 = vld [vmem:[%s1649_s3 + $0x8] sm:$0xff] }
   0x3   :  { %v1300_v5 = vpack.c.bf16 %v22_v4, %v21_v2  ;;  %v24_v7 = vld [vmem:[%s1650_s0] sm:$0x3]  ;;  %v1065_v11 = vld [vmem:[%s1651_s1 + $0xe] sm:$0x3]  ;;  %v1069_v63 = vld [vmem:[%s1650_s0 + $0x2] sm:$0x3] }
   0x4   :  { %36 = vmatpush.bf16.msra.mxu0 %v1295_v3  ;;  %162 = vmatpush.bf16.msra.mxu2 %v1295_v3  ;;  %v1071_v2 = vld [vmem:[%s1651_s1 + $0xc] sm:$0x3] }
   0x5   :  { %52 = vmatpush.bf16.msra.mxu1 %v1300_v5  ;;  %185 = vmatpush.bf16.msra.mxu3 %v1300_v5 }
   0x7   :  { %37 = vmatmul.bf16.vlgmr.msra.gmra.mxu0 %v1256_v6 }
   0x8   :  { %294 = vmatpush.bf16.msrb.mxu0 %v1295_v3  ;;  %426 = vmatpush.bf16.msrb.mxu2 %v1295_v3 }
   0x9   :  { %317 = vmatpush.bf16.msrb.mxu1 %v1300_v5  ;;  %449 = vmatpush.bf16.msrb.mxu3 %v1300_v5 }
   0xa   :  { %53 = vmatmul.bf16.vlgmr.msra.gmra.mxu1 %v1256_v6 }
   0xc   :  { %558 = vmatpush.bf16.msra.mxu0 %v1295_v3 }
   0xd   :  { %581 = vmatpush.bf16.msra.mxu1 %v1300_v5 }
  0x84   :  { %v38_v8 = vpop.f32.mrf.mxu0 }
  0x85   :  { %v42_v9 = vadd.f32 %v38_v8, %v24_v7 }
  0x87   :  { %v54_v10 = vpop.f32.mrf.mxu1  ;;  %1128 = vtanh.f32 %v42_v9  ;;  %v1066_v17 = vmul.f32 -1.442695, %v42_v9 }
  0x88   :  { %v58_v12 = vadd.f32 %v1065_v11, %v54_v10 }
  0x8a   :  { %1130 = vtanh.f32 %v58_v12  ;;  %v1067_v18 = vmul.f32 -1.442695, %v58_v12 }
  0x8b   :  { %1132 = vpow2.f32 %v1066_v17 }
  0x8c   :  { %v40_v13 = vpop.f32.mrf.mxu0  ;;  %1134 = vpow2.f32 %v1067_v18 }
  0x8d   :  { %v1129_v14 = vpop.eup %1128 }
  0x8e   :  { %81 = vrot.lane.b32.xlu0 %v1129_v14, %s1257_s25 }
  0x8f   :  { %v56_v15 = vpop.f32.mrf.mxu1 }
  0x90   :  { %v1131_v16 = vpop.eup %1130 }
  0x91   :  { %v1133_v19 = vpop.eup %1132 }
  0x92   :  { %v62_v20 = vadd.f32 1.0, %v1133_v19  ;;  %v1135_v21 = vpop.eup %1134 }
  0x93   :  { %v99_v22 = vadd.f32 1.0, %v1135_v21 }
  0x94   :  { %1136 = vrcp.f32 %v62_v20  ;;  %v74_v31 = vand.u32 2147483648, %v62_v20  ;;  %vm68_vm1 = vweird.f32 %v62_v20  ;;  %v72_v32 = vand.u32 2147483647, %v62_v20 }
  0x95   :  { %1138 = vrcp.f32 %v99_v22  ;;  %vm105_vm4 = vweird.f32 %v99_v22  ;;  %v111_v38 = vand.u32 2147483648, %v99_v22  ;;  %v109_v41 = vand.u32 2147483647, %v99_v22 }
  0x96   :  { %118 = vrot.lane.b32.xlu0 %v1131_v16, %s1257_s25  ;;  %v75_v35 = vor.u32 1.1754944e-38, %v74_v31  ;;  %vm73_vm3 = vcmp.eq.f32.partialorder %v72_v32, 8.507059e+37 }
  0x97   :  { %v112_v42 = vor.u32 1.1754944e-38, %v111_v38  ;;  %vm110_vm7 = vcmp.eq.f32.partialorder %v109_v41, 8.507059e+37 }
  0x9a   :  { %v1137_v23 = vpop.eup %1136 }
  0x9b   :  { %v64_v24 = vmul.f32 %v1137_v23, %v62_v20  ;;  %v1139_v26 = vpop.eup %1138  ;;  %vm69_vm0 = vweird.f32 %v1137_v23 }
  0x9c   :  { %v101_v28 = vmul.f32 %v1139_v26, %v99_v22  ;;  %vm70_vm2 = vmor %vm68_vm1, %vm69_vm0  ;;  %vm106_vm5 = vweird.f32 %v1139_v26 }
  0x9d   :  { %v65_v25 = vsub.f32 1.0, %v64_v24  ;;  %vm107_vm6 = vmor %vm105_vm4, %vm106_vm5 }
  0x9e   :  { %v102_v30 = vsub.f32 1.0, %v101_v28 }
  0x9f   :  { %v66_v27 = vmul.f32 %v1137_v23, %v65_v25 }
  0xa0   :  { %v103_v34 = vmul.f32 %v1139_v26, %v102_v30 }
  0xa1   :  { %v67_v29 = vadd.f32 %v1137_v23, %v66_v27 }
  0xa2   :  { %v104_v40 = vadd.f32 %v1139_v26, %v103_v34 }
  0xa3   :  { %v71_v33 = vsel %vm70_vm2, %v1137_v23, %v67_v29 }
  0xa4   :  { %v76_v37 = vsel %vm73_vm3, %v75_v35, %v71_v33  ;;  %v108_v43 = vsel %vm107_vm6, %v1139_v26, %v104_v40 }
  0xa5   :  { %v113_v44 = vsel %vm110_vm7, %v112_v42, %v108_v43  ;;  %v79_v47 = vmul.f32 0.0, %v76_v37 }
  0xa6   :  { %v116_v50 = vmul.f32 0.0, %v113_v44 }
 0x100   :  { %v82_v36 = vpop.permute.xlu0 %81 }
 0x101   :  { %v84_v39 = vmul.f32 %v82_v36, %v76_v37 }
 0x103   :  { %86 = vrot.lane.b32.xlu1 %v84_v39, %s1258_s26 }
 0x108   :  { %v119_v45 = vpop.permute.xlu0 %118 }
 0x109   :  { %v121_v46 = vmul.f32 %v119_v45, %v113_v44 }
 0x10b   :  { %123 = vrot.lane.b32.xlu1 %v121_v46, %s1258_s26 }
 0x175   :  { %v87_v48 = vpop.permute.xlu1 %86 }
 0x176   :  { %v1322_v49 = vadd.f32 %v87_v48, %v79_v47 }
 0x178   :  { %1140 = vtanh.f32 %v1322_v49 }
 0x17d   :  { %v124_v51 = vpop.permute.xlu1 %123 }
 0x17e   :  { %v1141_v52 = vpop.eup %1140  ;;  %v1325_v53 = vadd.f32 %v124_v51, %v116_v50 }
 0x17f   :  { %92 = vrot.lane.b32.xlu2 %v1141_v52, %s1259_s27 }
 0x180   :  { %1142 = vtanh.f32 %v1325_v53 }
 0x186   :  { %v1143_v54 = vpop.eup %1142 }
 0x187   :  { %129 = vrot.lane.b32.xlu2 %v1143_v54, %s1259_s27 }
 0x1d9   :  { %v93_v55 = vpop.permute.xlu2 %92 }
 0x1da   :  { %v1330_v56 = vmul.f32 %v93_v55, %v76_v37 }
 0x1dc   :  { %v148_v57 = vpack.c.bf16 %v1330_v56, %v1330_v56 }
 0x1de   :  { %150 = vrot.lane.b32.xlu0 %v148_v57, %s1260_s28 }
 0x1e1   :  { %v130_v58 = vpop.permute.xlu2 %129 }
 0x1e2   :  { %v1335_v59 = vmul.f32 %v130_v58, %v113_v44  ;;  %v1077_v58 = vld [vmem:[%s1650_s0 + $0x4] sm:$0x3] }
 0x1e4   :  { %v171_v60 = vpack.c.bf16 %v1335_v59, %v1335_v59 }
 0x1e6   :  { %173 = vrot.lane.b32.xlu1 %v171_v60, %s1260_s28 }
 0x250   :  { %v151_v61 = vpop.permute.xlu0 %150 }
 0x251   :  { %1070 = vmatmul.msk.bf16.vlgmr.msra.gmra.mxu2 %vm25_vm8, %v151_v61 }
 0x252   :  { %688 = vmatpush.bf16.msra.mxu2 %v1295_v3 }
 0x258   :  { %v174_v62 = vpop.permute.xlu1 %173 }
 0x259   :  { %1072 = vmatmul.msk.bf16.vlgmr.msra.gmra.mxu3 %vm25_vm8, %v174_v62 }
 0x25a   :  { %711 = vmatpush.bf16.msra.mxu3 %v1300_v5 }
 0x2d4   :  { %v164_v0 = vpop.f32.mrf.mxu2 }
 0x2d5   :  { %v168_v1 = vadd.f32 %v1069_v63, %v164_v0  ;;  %v1079_v0 = vld [vmem:[%s1651_s1 + $0xa] sm:$0x3] }
 0x2d7   :  { %1144 = vtanh.f32 %v168_v1  ;;  %v1073_v11 = vmul.f32 -1.442695, %v168_v1 }
 0x2dc   :  { %v166_v4 = vpop.f32.mrf.mxu2  ;;  %v187_v6 = vpop.f32.mrf.mxu3 }
 0x2dd   :  { %v1145_v7 = vpop.eup %1144  ;;  %v191_v8 = vadd.f32 %v1071_v2, %v187_v6 }
 0x2de   :  { %214 = vrot.lane.b32.xlu2 %v1145_v7, %s1257_s25 }
 0x2df   :  { %1146 = vtanh.f32 %v191_v8  ;;  %v1074_v17 = vmul.f32 -1.442695, %v191_v8 }
 0x2e0   :  { %1148 = vpow2.f32 %v1073_v11 }
 0x2e4   :  { %v189_v9 = vpop.f32.mrf.mxu3 }
 0x2e5   :  { %v1147_v10 = vpop.eup %1146 }
 0x2e6   :  { %251 = vrot.lane.b32.xlu0 %v1147_v10, %s1257_s25  ;;  %v1149_v12 = vpop.eup %1148 }
 0x2e7   :  { %v195_v13 = vadd.f32 1.0, %v1149_v12 }
 0x2e9   :  { %1150 = vrcp.f32 %v195_v13  ;;  %v207_v20 = vand.u32 2147483648, %v195_v13  ;;  %vm201_vm10 = vweird.f32 %v195_v13  ;;  %v205_v21 = vand.u32 2147483647, %v195_v13 }
 0x2ea   :  { %1152 = vpow2.f32 %v1074_v17 }
 0x2eb   :  { %v208_v24 = vor.u32 1.1754944e-38, %v207_v20  ;;  %vm206_vm12 = vcmp.eq.f32.partialorder %v205_v21, 8.507059e+37 }
 0x2ef   :  { %v1151_v14 = vpop.eup %1150 }
 0x2f0   :  { %v197_v15 = vmul.f32 %v1151_v14, %v195_v13  ;;  %vm202_vm9 = vweird.f32 %v1151_v14  ;;  %v1153_v22 = vpop.eup %1152 }
 0x2f1   :  { %vm203_vm11 = vmor %vm201_vm10, %vm202_vm9  ;;  %v232_v25 = vadd.f32 1.0, %v1153_v22 }
 0x2f2   :  { %v198_v16 = vsub.f32 1.0, %v197_v15 }
 0x2f3   :  { %1154 = vrcp.f32 %v232_v25  ;;  %v244_v34 = vand.u32 2147483648, %v232_v25  ;;  %vm238_vm14 = vweird.f32 %v232_v25  ;;  %v242_v35 = vand.u32 2147483647, %v232_v25 }
 0x2f4   :  { %v199_v18 = vmul.f32 %v1151_v14, %v198_v16 }
 0x2f5   :  { %v245_v37 = vor.u32 1.1754944e-38, %v244_v34  ;;  %vm243_vm0 = vcmp.eq.f32.partialorder %v242_v35, 8.507059e+37 }
 0x2f6   :  { %v200_v19 = vadd.f32 %v1151_v14, %v199_v18 }
 0x2f8   :  { %v204_v23 = vsel %vm203_vm11, %v1151_v14, %v200_v19 }
 0x2f9   :  { %v209_v26 = vsel %vm206_vm12, %v208_v24, %v204_v23  ;;  %v1155_v29 = vpop.eup %1154 }
 0x2fa   :  { %v234_v30 = vmul.f32 %v1155_v29, %v232_v25  ;;  %vm239_vm13 = vweird.f32 %v1155_v29  ;;  %v212_v41 = vmul.f32 %v209_v26, %v1322_v49 }
 0x2fb   :  { %vm240_vm15 = vmor %vm238_vm14, %vm239_vm13 }
 0x2fc   :  { %v235_v31 = vsub.f32 1.0, %v234_v30 }
 0x2fe   :  { %v236_v32 = vmul.f32 %v1155_v29, %v235_v31 }
 0x300   :  { %v237_v33 = vadd.f32 %v1155_v29, %v236_v32 }
 0x302   :  { %v241_v36 = vsel %vm240_vm15, %v1155_v29, %v237_v33 }
 0x303   :  { %v246_v39 = vsel %vm243_vm0, %v245_v37, %v241_v36 }
 0x304   :  { %v249_v44 = vmul.f32 %v246_v39, %v1325_v53 }
 0x338   :  { %v215_v27 = vpop.permute.xlu2 %214 }
 0x339   :  { %v217_v28 = vmul.f32 %v215_v27, %v209_v26 }
 0x33b   :  { %219 = vrot.lane.b32.xlu1 %v217_v28, %s1258_s26 }
 0x358   :  { %v252_v38 = vpop.permute.xlu0 %251 }
 0x359   :  { %v254_v40 = vmul.f32 %v252_v38, %v246_v39 }
 0x35b   :  { %256 = vrot.lane.b32.xlu2 %v254_v40, %s1258_s26 }
 0x3ad   :  { %v220_v42 = vpop.permute.xlu1 %219 }
 0x3ae   :  { %v1355_v43 = vadd.f32 %v220_v42, %v212_v41 }
 0x3b0   :  { %1156 = vtanh.f32 %v1355_v43 }
 0x3b5   :  { %v257_v45 = vpop.permute.xlu2 %256 }
 0x3b6   :  { %v1157_v46 = vpop.eup %1156  ;;  %v1359_v47 = vadd.f32 %v257_v45, %v249_v44 }
 0x3b7   :  { %225 = vrot.lane.b32.xlu0 %v1157_v46, %s1259_s27 }
 0x3b8   :  { %1158 = vtanh.f32 %v1359_v47 }
 0x3be   :  { %v1159_v48 = vpop.eup %1158 }
 0x3bf   :  { %262 = vrot.lane.b32.xlu1 %v1159_v48, %s1259_s27 }
 0x429   :  { %v226_v50 = vpop.permute.xlu0 %225 }
 0x42a   :  { %v1364_v49 = vmul.f32 %v226_v50, %v209_v26 }
 0x42c   :  { %v280_v51 = vpack.c.bf16 %v1364_v49, %v1364_v49 }
 0x42e   :  { %282 = vrot.lane.b32.xlu2 %v280_v51, %s1260_s28 }
 0x431   :  { %v263_v52 = vpop.permute.xlu1 %262 }
 0x432   :  { %v1369_v53 = vmul.f32 %v263_v52, %v246_v39 }
 0x434   :  { %v303_v54 = vpack.c.bf16 %v1369_v53, %v1369_v53 }
 0x436   :  { %305 = vrot.lane.b32.xlu0 %v303_v54, %s1260_s28 }
 0x488   :  { %v283_v55 = vpop.permute.xlu2 %282 }
 0x489   :  { %1078 = vmatmul.msk.bf16.vlgmr.msrb.gmra.mxu0 %vm25_vm8, %v283_v55  ;;  %v1085_v55 = vld [vmem:[%s1650_s0 + $0x6] sm:$0x3] }
 0x48a   :  { %818 = vmatpush.bf16.msrb.mxu0 %v1295_v3 }
 0x4a8   :  { %v306_v57 = vpop.permute.xlu0 %305 }
 0x4a9   :  { %1080 = vmatmul.msk.bf16.vlgmr.msrb.gmra.mxu1 %vm25_vm8, %v306_v57 }
 0x4aa   :  { %841 = vmatpush.bf16.msrb.mxu1 %v1300_v5 }
 0x506   :  { %v296_v60 = vpop.f32.mrf.mxu0 }
 0x507   :  { %v300_v61 = vadd.f32 %v1077_v58, %v296_v60  ;;  %v1087_v60 = vld [vmem:[%s1651_s1 + $0x8] sm:$0x3] }
 0x509   :  { %1160 = vtanh.f32 %v300_v61  ;;  %v1081_v7 = vmul.f32 -1.442695, %v300_v61 }
 0x50e   :  { %v298_v62 = vpop.f32.mrf.mxu0 }
 0x50f   :  { %v1161_v63 = vpop.eup %1160 }
 0x510   :  { %346 = vrot.lane.b32.xlu1 %v1161_v63, %s1257_s25 }
 0x526   :  { %v319_v1 = vpop.f32.mrf.mxu1 }
 0x527   :  { %v323_v2 = vadd.f32 %v1079_v0, %v319_v1 }
 0x529   :  { %1162 = vtanh.f32 %v323_v2  ;;  %v1082_v8 = vmul.f32 -1.442695, %v323_v2 }
 0x52a   :  { %1164 = vpow2.f32 %v1081_v7 }
 0x52b   :  { %1166 = vpow2.f32 %v1082_v8 }
 0x52e   :  { %v321_v4 = vpop.f32.mrf.mxu1 }
 0x52f   :  { %v1163_v6 = vpop.eup %1162 }
 0x530   :  { %383 = vrot.lane.b32.xlu2 %v1163_v6, %s1257_s25  ;;  %v1165_v9 = vpop.eup %1164 }
 0x531   :  { %v327_v10 = vadd.f32 1.0, %v1165_v9  ;;  %v1167_v11 = vpop.eup %1166 }
 0x532   :  { %v364_v12 = vadd.f32 1.0, %v1167_v11 }
 0x533   :  { %1168 = vrcp.f32 %v327_v10  ;;  %v339_v21 = vand.u32 2147483648, %v327_v10  ;;  %vm333_vm2 = vweird.f32 %v327_v10  ;;  %v337_v22 = vand.u32 2147483647, %v327_v10 }
 0x534   :  { %1170 = vrcp.f32 %v364_v12  ;;  %v376_v30 = vand.u32 2147483648, %v364_v12  ;;  %vm370_vm6 = vweird.f32 %v364_v12  ;;  %v374_v31 = vand.u32 2147483647, %v364_v12 }
 0x535   :  { %v340_v25 = vor.u32 1.1754944e-38, %v339_v21  ;;  %vm338_vm4 = vcmp.eq.f32.partialorder %v337_v22, 8.507059e+37 }
 0x536   :  { %v377_v33 = vor.u32 1.1754944e-38, %v376_v30  ;;  %vm375_vm9 = vcmp.eq.f32.partialorder %v374_v31, 8.507059e+37 }
 0x539   :  { %v1169_v13 = vpop.eup %1168 }
 0x53a   :  { %v329_v14 = vmul.f32 %v1169_v13, %v327_v10  ;;  %v1171_v16 = vpop.eup %1170  ;;  %vm334_vm1 = vweird.f32 %v1169_v13 }
 0x53b   :  { %v366_v18 = vmul.f32 %v1171_v16, %v364_v12  ;;  %vm335_vm3 = vmor %vm333_vm2, %vm334_vm1  ;;  %vm371_vm5 = vweird.f32 %v1171_v16 }
 0x53c   :  { %v330_v15 = vsub.f32 1.0, %v329_v14  ;;  %vm372_vm7 = vmor %vm370_vm6, %vm371_vm5 }
 0x53d   :  { %v367_v20 = vsub.f32 1.0, %v366_v18 }
 0x53e   :  { %v331_v17 = vmul.f32 %v1169_v13, %v330_v15 }
 0x53f   :  { %v368_v24 = vmul.f32 %v1171_v16, %v367_v20 }
 0x540   :  { %v332_v19 = vadd.f32 %v1169_v13, %v331_v17 }
 0x541   :  { %v369_v29 = vadd.f32 %v1171_v16, %v368_v24 }
 0x542   :  { %v336_v23 = vsel %vm335_vm3, %v1169_v13, %v332_v19 }
 0x543   :  { %v341_v27 = vsel %vm338_vm4, %v340_v25, %v336_v23  ;;  %v373_v32 = vsel %vm372_vm7, %v1171_v16, %v369_v29 }
 0x544   :  { %v378_v34 = vsel %vm375_vm9, %v377_v33, %v373_v32  ;;  %v344_v37 = vmul.f32 %v341_v27, %v1355_v43 }
 0x545   :  { %v381_v40 = vmul.f32 %v378_v34, %v1359_v47 }
 0x582   :  { %v347_v26 = vpop.permute.xlu1 %346 }
 0x583   :  { %v349_v28 = vmul.f32 %v347_v26, %v341_v27 }
 0x585   :  { %351 = vrot.lane.b32.xlu0 %v349_v28, %s1258_s26 }
 0x58a   :  { %v384_v35 = vpop.permute.xlu2 %383 }
 0x58b   :  { %v386_v36 = vmul.f32 %v384_v35, %v378_v34 }
 0x58d   :  { %388 = vrot.lane.b32.xlu1 %v386_v36, %s1258_s26 }
 0x5f7   :  { %v352_v38 = vpop.permute.xlu0 %351 }
 0x5f8   :  { %v1389_v39 = vadd.f32 %v352_v38, %v344_v37 }
 0x5fa   :  { %1172 = vtanh.f32 %v1389_v39 }
 0x5ff   :  { %v389_v41 = vpop.permute.xlu1 %388 }
 0x600   :  { %v1173_v42 = vpop.eup %1172  ;;  %v1393_v44 = vadd.f32 %v389_v41, %v381_v40 }
 0x601   :  { %357 = vrot.lane.b32.xlu2 %v1173_v42, %s1259_s27 }
 0x602   :  { %1174 = vtanh.f32 %v1393_v44 }
 0x608   :  { %v1175_v45 = vpop.eup %1174 }
 0x609   :  { %394 = vrot.lane.b32.xlu0 %v1175_v45, %s1259_s27 }
 0x65b   :  { %v358_v46 = vpop.permute.xlu2 %357 }
 0x65c   :  { %v1398_v43 = vmul.f32 %v358_v46, %v341_v27 }
 0x65e   :  { %v412_v48 = vpack.c.bf16 %v1398_v43, %v1398_v43 }
 0x660   :  { %414 = vrot.lane.b32.xlu1 %v412_v48, %s1260_s28 }
 0x67b   :  { %v395_v47 = vpop.permute.xlu0 %394 }
 0x67c   :  { %v1403_v50 = vmul.f32 %v395_v47, %v378_v34 }
 0x67e   :  { %v435_v51 = vpack.c.bf16 %v1403_v50, %v1403_v50 }
 0x680   :  { %437 = vrot.lane.b32.xlu2 %v435_v51, %s1260_s28 }
 0x6d2   :  { %v415_v52 = vpop.permute.xlu1 %414 }
 0x6d3   :  { %1086 = vmatmul.msk.bf16.vlgmr.msrb.gmra.mxu2 %vm25_vm8, %v415_v52  ;;  %v1093_v52 = vld [vmem:[%s1650_s0 + $0x8] sm:$0x3] }
 0x6d4   :  { %948 = vmatpush.bf16.msrb.mxu2 %v1295_v3 }
 0x6da   :  { %v438_v54 = vpop.permute.xlu2 %437 }
 0x6db   :  { %1088 = vmatmul.msk.bf16.vlgmr.msrb.gmra.mxu3 %vm25_vm8, %v438_v54 }
 0x6dc   :  { %970 = vmatpush.bf16.msrb.mxu3 %v1300_v5 }
 0x756   :  { %v428_v57 = vpop.f32.mrf.mxu2 }
 0x757   :  { %v432_v58 = vadd.f32 %v1085_v55, %v428_v57  ;;  %v1095_v57 = vld [vmem:[%s1651_s1 + $0x6] sm:$0x3] }
 0x759   :  { %1176 = vtanh.f32 %v432_v58  ;;  %v1089_v1 = vmul.f32 -1.442695, %v432_v58 }
 0x75e   :  { %v430_v61 = vpop.f32.mrf.mxu2  ;;  %v451_v62 = vpop.f32.mrf.mxu3 }
 0x75f   :  { %v1177_v63 = vpop.eup %1176  ;;  %v455_v3 = vadd.f32 %v1087_v60, %v451_v62 }
 0x760   :  { %478 = vrot.lane.b32.xlu0 %v1177_v63, %s1257_s25 }
 0x761   :  { %1178 = vtanh.f32 %v455_v3  ;;  %v1090_v2 = vmul.f32 -1.442695, %v455_v3 }
 0x762   :  { %1180 = vpow2.f32 %v1089_v1 }
 0x763   :  { %1182 = vpow2.f32 %v1090_v2 }
 0x766   :  { %v453_v0 = vpop.f32.mrf.mxu3 }
 0x767   :  { %v1179_v5 = vpop.eup %1178 }
 0x768   :  { %515 = vrot.lane.b32.xlu1 %v1179_v5, %s1257_s25  ;;  %v1181_v4 = vpop.eup %1180 }
 0x769   :  { %v459_v6 = vadd.f32 1.0, %v1181_v4  ;;  %v1183_v7 = vpop.eup %1182 }
 0x76a   :  { %v496_v8 = vadd.f32 1.0, %v1183_v7 }
 0x76b   :  { %1184 = vrcp.f32 %v459_v6  ;;  %v471_v17 = vand.u32 2147483648, %v459_v6  ;;  %vm465_vm11 = vweird.f32 %v459_v6  ;;  %v469_v18 = vand.u32 2147483647, %v459_v6 }
 0x76c   :  { %1186 = vrcp.f32 %v496_v8  ;;  %v508_v26 = vand.u32 2147483648, %v496_v8  ;;  %vm502_vm15 = vweird.f32 %v496_v8  ;;  %v506_v27 = vand.u32 2147483647, %v496_v8 }
 0x76d   :  { %v472_v21 = vor.u32 1.1754944e-38, %v471_v17  ;;  %vm470_vm13 = vcmp.eq.f32.partialorder %v469_v18, 8.507059e+37 }
 0x76e   :  { %v509_v29 = vor.u32 1.1754944e-38, %v508_v26  ;;  %vm507_vm1 = vcmp.eq.f32.partialorder %v506_v27, 8.507059e+37 }
 0x771   :  { %v1185_v9 = vpop.eup %1184 }
 0x772   :  { %v461_v10 = vmul.f32 %v1185_v9, %v459_v6  ;;  %v1187_v12 = vpop.eup %1186  ;;  %vm466_vm10 = vweird.f32 %v1185_v9 }
 0x773   :  { %v498_v14 = vmul.f32 %v1187_v12, %v496_v8  ;;  %vm467_vm12 = vmor %vm465_vm11, %vm466_vm10  ;;  %vm503_vm14 = vweird.f32 %v1187_v12 }
 0x774   :  { %v462_v11 = vsub.f32 1.0, %v461_v10  ;;  %vm504_vm0 = vmor %vm502_vm15, %vm503_vm14 }
 0x775   :  { %v499_v16 = vsub.f32 1.0, %v498_v14 }
 0x776   :  { %v463_v13 = vmul.f32 %v1185_v9, %v462_v11 }
 0x777   :  { %v500_v20 = vmul.f32 %v1187_v12, %v499_v16 }
 0x778   :  { %v464_v15 = vadd.f32 %v1185_v9, %v463_v13 }
 0x779   :  { %v501_v25 = vadd.f32 %v1187_v12, %v500_v20 }
 0x77a   :  { %v468_v19 = vsel %vm467_vm12, %v1185_v9, %v464_v15 }
 0x77b   :  { %v473_v23 = vsel %vm470_vm13, %v472_v21, %v468_v19  ;;  %v505_v28 = vsel %vm504_vm0, %v1187_v12, %v501_v25 }
 0x77c   :  { %v510_v31 = vsel %vm507_vm1, %v509_v29, %v505_v28  ;;  %v476_v33 = vmul.f32 %v473_v23, %v1389_v39 }
 0x77d   :  { %v513_v37 = vmul.f32 %v510_v31, %v1393_v44 }
 0x7d2   :  { %v479_v22 = vpop.permute.xlu0 %478 }
 0x7d3   :  { %v481_v24 = vmul.f32 %v479_v22, %v473_v23 }
 0x7d5   :  { %483 = vrot.lane.b32.xlu2 %v481_v24, %s1258_s26 }
 0x7da   :  { %v516_v30 = vpop.permute.xlu1 %515 }
 0x7db   :  { %v518_v32 = vmul.f32 %v516_v30, %v510_v31 }
 0x7dd   :  { %520 = vrot.lane.b32.xlu0 %v518_v32, %s1258_s26 }
 0x82f   :  { %v484_v34 = vpop.permute.xlu2 %483 }
 0x830   :  { %v1423_v35 = vadd.f32 %v484_v34, %v476_v33 }
 0x832   :  { %1188 = vtanh.f32 %v1423_v35 }
 0x838   :  { %v1189_v36 = vpop.eup %1188 }
 0x839   :  { %489 = vrot.lane.b32.xlu1 %v1189_v36, %s1259_s27 }
 0x84f   :  { %v521_v38 = vpop.permute.xlu0 %520 }
 0x850   :  { %v1428_v40 = vadd.f32 %v521_v38, %v513_v37 }
 0x852   :  { %1190 = vtanh.f32 %v1428_v40 }
 0x858   :  { %v1191_v41 = vpop.eup %1190 }
 0x859   :  { %526 = vrot.lane.b32.xlu2 %v1191_v41, %s1259_s27 }
 0x8ab   :  { %v490_v42 = vpop.permute.xlu1 %489 }
 0x8ac   :  { %v1432_v39 = vmul.f32 %v490_v42, %v473_v23 }
 0x8ae   :  { %v544_v45 = vpack.c.bf16 %v1432_v39, %v1432_v39 }
 0x8b0   :  { %546 = vrot.lane.b32.xlu0 %v544_v45, %s1260_s28 }
 0x8b3   :  { %v527_v46 = vpop.permute.xlu2 %526 }
 0x8b4   :  { %v1437_v48 = vmul.f32 %v527_v46, %v510_v31 }
 0x8b6   :  { %v567_v44 = vpack.c.bf16 %v1437_v48, %v1437_v48 }
 0x8b8   :  { %569 = vrot.lane.b32.xlu1 %v567_v44, %s1260_s28 }
 0x922   :  { %v547_v47 = vpop.permute.xlu0 %546 }
 0x923   :  { %1094 = vmatmul.msk.bf16.vlgmr.msra.gmra.mxu0 %vm25_vm8, %v547_v47 }
 0x92a   :  { %v570_v51 = vpop.permute.xlu1 %569 }
 0x92b   :  { %1096 = vmatmul.msk.bf16.vlgmr.msra.gmra.mxu1 %vm25_vm8, %v570_v51 }
 0x9a0   :  { %v560_v54 = vpop.f32.mrf.mxu0 }
 0x9a1   :  { %v564_v55 = vadd.f32 %v1093_v52, %v560_v54  ;;  %v1101_v52 = vld [vmem:[%s1650_s0 + $0xa] sm:$0x3] }
 0x9a3   :  { %1192 = vtanh.f32 %v564_v55  ;;  %v1097_v0 = vmul.f32 -1.442695, %v564_v55 }
 0x9a8   :  { %v562_v58 = vpop.f32.mrf.mxu0  ;;  %v583_v60 = vpop.f32.mrf.mxu1 }
 0x9a9   :  { %v1193_v61 = vpop.eup %1192  ;;  %v587_v62 = vadd.f32 %v1095_v57, %v583_v60  ;;  %v1103_v60 = vld [vmem:[%s1651_s1 + $0x4] sm:$0x3] }
 0x9aa   :  { %610 = vrot.lane.b32.xlu2 %v1193_v61, %s1257_s25 }
 0x9ab   :  { %1194 = vtanh.f32 %v587_v62  ;;  %v1098_v7 = vmul.f32 -1.442695, %v587_v62 }
 0x9ac   :  { %1196 = vpow2.f32 %v1097_v0 }
 0x9b0   :  { %v585_v63 = vpop.f32.mrf.mxu1 }
 0x9b1   :  { %v1195_v3 = vpop.eup %1194 }
 0x9b2   :  { %647 = vrot.lane.b32.xlu0 %v1195_v3, %s1257_s25  ;;  %v1197_v5 = vpop.eup %1196 }
 0x9b3   :  { %v591_v1 = vadd.f32 1.0, %v1197_v5 }
 0x9b5   :  { %1198 = vrcp.f32 %v591_v1  ;;  %v603_v10 = vand.u32 2147483648, %v591_v1  ;;  %vm597_vm3 = vweird.f32 %v591_v1  ;;  %v601_v11 = vand.u32 2147483647, %v591_v1 }
 0x9b6   :  { %1200 = vpow2.f32 %v1098_v7 }
 0x9b7   :  { %v604_v14 = vor.u32 1.1754944e-38, %v603_v10  ;;  %vm602_vm5 = vcmp.eq.f32.partialorder %v601_v11, 8.507059e+37 }
 0x9bb   :  { %v1199_v2 = vpop.eup %1198 }
 0x9bc   :  { %v593_v4 = vmul.f32 %v1199_v2, %v591_v1  ;;  %vm598_vm2 = vweird.f32 %v1199_v2  ;;  %v1201_v12 = vpop.eup %1200 }
 0x9bd   :  { %vm599_vm4 = vmor %vm597_vm3, %vm598_vm2  ;;  %v628_v15 = vadd.f32 1.0, %v1201_v12 }
 0x9be   :  { %v594_v6 = vsub.f32 1.0, %v593_v4 }
 0x9bf   :  { %1202 = vrcp.f32 %v628_v15  ;;  %v640_v24 = vand.u32 2147483648, %v628_v15  ;;  %vm634_vm7 = vweird.f32 %v628_v15  ;;  %v638_v25 = vand.u32 2147483647, %v628_v15 }
 0x9c0   :  { %v595_v8 = vmul.f32 %v1199_v2, %v594_v6 }
 0x9c1   :  { %v641_v27 = vor.u32 1.1754944e-38, %v640_v24  ;;  %vm639_vm10 = vcmp.eq.f32.partialorder %v638_v25, 8.507059e+37 }
 0x9c2   :  { %v596_v9 = vadd.f32 %v1199_v2, %v595_v8 }
 0x9c4   :  { %v600_v13 = vsel %vm599_vm4, %v1199_v2, %v596_v9 }
 0x9c5   :  { %v605_v16 = vsel %vm602_vm5, %v604_v14, %v600_v13  ;;  %v1203_v19 = vpop.eup %1202 }
 0x9c6   :  { %v630_v20 = vmul.f32 %v1203_v19, %v628_v15  ;;  %vm635_vm6 = vweird.f32 %v1203_v19  ;;  %v608_v31 = vmul.f32 %v605_v16, %v1423_v35 }
 0x9c7   :  { %vm636_vm9 = vmor %vm634_vm7, %vm635_vm6 }
 0x9c8   :  { %v631_v21 = vsub.f32 1.0, %v630_v20 }
 0x9ca   :  { %v632_v22 = vmul.f32 %v1203_v19, %v631_v21 }
 0x9cc   :  { %v633_v23 = vadd.f32 %v1203_v19, %v632_v22 }
 0x9ce   :  { %v637_v26 = vsel %vm636_vm9, %v1203_v19, %v633_v23 }
 0x9cf   :  { %v642_v29 = vsel %vm639_vm10, %v641_v27, %v637_v26 }
 0x9d0   :  { %v645_v34 = vmul.f32 %v642_v29, %v1428_v40 }
 0xa04   :  { %v611_v17 = vpop.permute.xlu2 %610 }
 0xa05   :  { %v613_v18 = vmul.f32 %v611_v17, %v605_v16 }
 0xa07   :  { %615 = vrot.lane.b32.xlu1 %v613_v18, %s1258_s26 }
 0xa24   :  { %v648_v28 = vpop.permute.xlu0 %647 }
 0xa25   :  { %v650_v30 = vmul.f32 %v648_v28, %v642_v29 }
 0xa27   :  { %652 = vrot.lane.b32.xlu2 %v650_v30, %s1258_s26 }
 0xa79   :  { %v616_v32 = vpop.permute.xlu1 %615 }
 0xa7a   :  { %v1455_v33 = vadd.f32 %v616_v32, %v608_v31 }
 0xa7c   :  { %1204 = vtanh.f32 %v1455_v33 }
 0xa81   :  { %v653_v36 = vpop.permute.xlu2 %652 }
 0xa82   :  { %v1205_v37 = vpop.eup %1204  ;;  %v1459_v38 = vadd.f32 %v653_v36, %v645_v34 }
 0xa83   :  { %621 = vrot.lane.b32.xlu0 %v1205_v37, %s1259_s27 }
 0xa84   :  { %1206 = vtanh.f32 %v1459_v38 }
 0xa8a   :  { %v1207_v41 = vpop.eup %1206 }
 0xa8b   :  { %658 = vrot.lane.b32.xlu1 %v1207_v41, %s1259_s27 }
 0xaf5   :  { %v622_v42 = vpop.permute.xlu0 %621 }
 0xaf6   :  { %v1464_v35 = vmul.f32 %v622_v42, %v605_v16 }
 0xaf8   :  { %v674_v45 = vpack.c.bf16 %v1464_v35, %v1464_v35 }
 0xafa   :  { %676 = vrot.lane.b32.xlu2 %v674_v45, %s1260_s28 }
 0xafd   :  { %v659_v40 = vpop.permute.xlu1 %658 }
 0xafe   :  { %v1469_v46 = vmul.f32 %v659_v40, %v642_v29 }
 0xb00   :  { %v697_v44 = vpack.c.bf16 %v1469_v46, %v1469_v46 }
 0xb02   :  { %699 = vrot.lane.b32.xlu0 %v697_v44, %s1260_s28 }
 0xb54   :  { %v677_v47 = vpop.permute.xlu2 %676 }
 0xb55   :  { %1102 = vmatmul.msk.bf16.vlgmr.msra.gmra.mxu2 %vm25_vm8, %v677_v47 }
 0xb74   :  { %v700_v51 = vpop.permute.xlu0 %699 }
 0xb75   :  { %1104 = vmatmul.msk.bf16.vlgmr.msra.gmra.mxu3 %vm25_vm8, %v700_v51 }
 0xbd8   :  { %v690_v54 = vpop.f32.mrf.mxu2 }
 0xbd9   :  { %v694_v55 = vadd.f32 %v1101_v52, %v690_v54 }
 0xbdb   :  { %1208 = vtanh.f32 %v694_v55  ;;  %v1105_v0 = vmul.f32 -1.442695, %v694_v55  ;;  %v1109_v55 = vld [vmem:[%s1650_s0 + $0xc] sm:$0x3] }
 0xbe0   :  { %v692_v57 = vpop.f32.mrf.mxu2 }
 0xbe1   :  { %v1209_v58 = vpop.eup %1208 }
 0xbe2   :  { %740 = vrot.lane.b32.xlu1 %v1209_v58, %s1257_s25 }
 0xbf8   :  { %v713_v61 = vpop.f32.mrf.mxu3 }
 0xbf9   :  { %v717_v62 = vadd.f32 %v1103_v60, %v713_v61  ;;  %v1111_v60 = vld [vmem:[%s1651_s1 + $0x2] sm:$0x3] }
 0xbfb   :  { %1210 = vtanh.f32 %v717_v62  ;;  %v1106_v5 = vmul.f32 -1.442695, %v717_v62 }
 0xbfc   :  { %1212 = vpow2.f32 %v1105_v0 }
 0xbfd   :  { %1214 = vpow2.f32 %v1106_v5 }
 0xc00   :  { %v715_v63 = vpop.f32.mrf.mxu3 }
 0xc01   :  { %v1211_v3 = vpop.eup %1210 }
 0xc02   :  { %777 = vrot.lane.b32.xlu2 %v1211_v3, %s1257_s25  ;;  %v1213_v1 = vpop.eup %1212 }
 0xc03   :  { %v721_v2 = vadd.f32 1.0, %v1213_v1  ;;  %v1215_v4 = vpop.eup %1214 }
 0xc04   :  { %v758_v6 = vadd.f32 1.0, %v1215_v4 }
 0xc05   :  { %1216 = vrcp.f32 %v721_v2  ;;  %v733_v15 = vand.u32 2147483648, %v721_v2  ;;  %vm727_vm12 = vweird.f32 %v721_v2  ;;  %v731_v16 = vand.u32 2147483647, %v721_v2 }
 0xc06   :  { %1218 = vrcp.f32 %v758_v6  ;;  %v770_v24 = vand.u32 2147483648, %v758_v6  ;;  %vm764_vm0 = vweird.f32 %v758_v6  ;;  %v768_v25 = vand.u32 2147483647, %v758_v6 }
 0xc07   :  { %v734_v19 = vor.u32 1.1754944e-38, %v733_v15  ;;  %vm732_vm14 = vcmp.eq.f32.partialorder %v731_v16, 8.507059e+37 }
 0xc08   :  { %v771_v27 = vor.u32 1.1754944e-38, %v770_v24  ;;  %vm769_vm2 = vcmp.eq.f32.partialorder %v768_v25, 8.507059e+37 }
 0xc0b   :  { %v1217_v7 = vpop.eup %1216 }
 0xc0c   :  { %v723_v8 = vmul.f32 %v1217_v7, %v721_v2  ;;  %v1219_v10 = vpop.eup %1218  ;;  %vm728_vm11 = vweird.f32 %v1217_v7 }
 0xc0d   :  { %v760_v12 = vmul.f32 %v1219_v10, %v758_v6  ;;  %vm729_vm13 = vmor %vm727_vm12, %vm728_vm11  ;;  %vm765_vm15 = vweird.f32 %v1219_v10 }
 0xc0e   :  { %v724_v9 = vsub.f32 1.0, %v723_v8  ;;  %vm766_vm1 = vmor %vm764_vm0, %vm765_vm15 }
 0xc0f   :  { %v761_v14 = vsub.f32 1.0, %v760_v12 }
 0xc10   :  { %v725_v11 = vmul.f32 %v1217_v7, %v724_v9 }
 0xc11   :  { %v762_v18 = vmul.f32 %v1219_v10, %v761_v14 }
 0xc12   :  { %v726_v13 = vadd.f32 %v1217_v7, %v725_v11 }
 0xc13   :  { %v763_v23 = vadd.f32 %v1219_v10, %v762_v18 }
 0xc14   :  { %v730_v17 = vsel %vm729_vm13, %v1217_v7, %v726_v13 }
 0xc15   :  { %v735_v21 = vsel %vm732_vm14, %v734_v19, %v730_v17  ;;  %v767_v26 = vsel %vm766_vm1, %v1219_v10, %v763_v23 }
 0xc16   :  { %v772_v28 = vsel %vm769_vm2, %v771_v27, %v767_v26  ;;  %v738_v31 = vmul.f32 %v735_v21, %v1455_v33 }
 0xc17   :  { %v775_v36 = vmul.f32 %v772_v28, %v1459_v38 }
 0xc54   :  { %v741_v20 = vpop.permute.xlu1 %740 }
 0xc55   :  { %v743_v22 = vmul.f32 %v741_v20, %v735_v21 }
 0xc57   :  { %745 = vrot.lane.b32.xlu0 %v743_v22, %s1258_s26 }
 0xc5c   :  { %v778_v29 = vpop.permute.xlu2 %777 }
 0xc5d   :  { %v780_v30 = vmul.f32 %v778_v29, %v772_v28 }
 0xc5f   :  { %782 = vrot.lane.b32.xlu1 %v780_v30, %s1258_s26 }
 0xcc9   :  { %v746_v32 = vpop.permute.xlu0 %745 }
 0xcca   :  { %v1487_v34 = vadd.f32 %v746_v32, %v738_v31 }
 0xccc   :  { %1220 = vtanh.f32 %v1487_v34 }
 0xcd1   :  { %v783_v37 = vpop.permute.xlu1 %782 }
 0xcd2   :  { %v1221_v41 = vpop.eup %1220  ;;  %v1491_v42 = vadd.f32 %v783_v37, %v775_v36 }
 0xcd3   :  { %751 = vrot.lane.b32.xlu2 %v1221_v41, %s1259_s27 }
 0xcd4   :  { %1222 = vtanh.f32 %v1491_v42 }
 0xcda   :  { %v1223_v45 = vpop.eup %1222 }
 0xcdb   :  { %788 = vrot.lane.b32.xlu0 %v1223_v45, %s1259_s27 }
 0xd2d   :  { %v752_v40 = vpop.permute.xlu2 %751 }
 0xd2e   :  { %v1496_v33 = vmul.f32 %v752_v40, %v735_v21 }
 0xd30   :  { %v804_v44 = vpack.c.bf16 %v1496_v33, %v1496_v33 }
 0xd32   :  { %806 = vrot.lane.b32.xlu1 %v804_v44, %s1260_s28 }
 0xd4d   :  { %v789_v38 = vpop.permute.xlu0 %788 }
 0xd4e   :  { %v1501_v47 = vmul.f32 %v789_v38, %v772_v28 }
 0xd50   :  { %v827_v51 = vpack.c.bf16 %v1501_v47, %v1501_v47 }
 0xd52   :  { %829 = vrot.lane.b32.xlu2 %v827_v51, %s1260_s28 }
 0xda4   :  { %v807_v52 = vpop.permute.xlu1 %806 }
 0xda5   :  { %1110 = vmatmul.msk.bf16.vlgmr.msrb.gmra.mxu0 %vm25_vm8, %v807_v52 }
 0xdac   :  { %v830_v54 = vpop.permute.xlu2 %829 }
 0xdad   :  { %1112 = vmatmul.msk.bf16.vlgmr.msrb.gmra.mxu1 %vm25_vm8, %v830_v54 }
 0xe22   :  { %v820_v57 = vpop.f32.mrf.mxu0 }
 0xe23   :  { %v824_v58 = vadd.f32 %v1109_v55, %v820_v57 }
 0xe25   :  { %1224 = vtanh.f32 %v824_v58  ;;  %v1113_v1 = vmul.f32 -1.442695, %v824_v58 }
 0xe2a   :  { %v822_v61 = vpop.f32.mrf.mxu0  ;;  %v843_v62 = vpop.f32.mrf.mxu1 }
 0xe2b   :  { %v1225_v63 = vpop.eup %1224  ;;  %v847_v3 = vadd.f32 %v1111_v60, %v843_v62  ;;  %v1117_v61 = vld [vmem:[%s1650_s0 + $0xe] sm:$0x3] }
 0xe2c   :  { %870 = vrot.lane.b32.xlu0 %v1225_v63, %s1257_s25 }
 0xe2d   :  { %1226 = vtanh.f32 %v847_v3  ;;  %v1114_v2 = vmul.f32 -1.442695, %v847_v3  ;;  %v955_v3 = vld [vmem:[%s1651_s1] sm:$0x3] }
 0xe2e   :  { %1228 = vpow2.f32 %v1113_v1 }
 0xe2f   :  { %1230 = vpow2.f32 %v1114_v2 }
 0xe32   :  { %v845_v0 = vpop.f32.mrf.mxu1 }
 0xe33   :  { %v1227_v5 = vpop.eup %1226 }
 0xe34   :  { %907 = vrot.lane.b32.xlu1 %v1227_v5, %s1257_s25  ;;  %v1229_v4 = vpop.eup %1228 }
 0xe35   :  { %v851_v6 = vadd.f32 1.0, %v1229_v4  ;;  %v1231_v7 = vpop.eup %1230 }
 0xe36   :  { %v888_v8 = vadd.f32 1.0, %v1231_v7 }
 0xe37   :  { %1232 = vrcp.f32 %v851_v6  ;;  %v863_v17 = vand.u32 2147483648, %v851_v6  ;;  %vm857_vm4 = vweird.f32 %v851_v6  ;;  %v861_v18 = vand.u32 2147483647, %v851_v6 }
 0xe38   :  { %1234 = vrcp.f32 %v888_v8  ;;  %v900_v26 = vand.u32 2147483648, %v888_v8  ;;  %vm894_vm9 = vweird.f32 %v888_v8  ;;  %v898_v27 = vand.u32 2147483647, %v888_v8 }
 0xe39   :  { %v864_v21 = vor.u32 1.1754944e-38, %v863_v17  ;;  %vm862_vm6 = vcmp.eq.f32.partialorder %v861_v18, 8.507059e+37 }
 0xe3a   :  { %v901_v29 = vor.u32 1.1754944e-38, %v900_v26  ;;  %vm899_vm11 = vcmp.eq.f32.partialorder %v898_v27, 8.507059e+37 }
 0xe3d   :  { %v1233_v9 = vpop.eup %1232 }
 0xe3e   :  { %v853_v10 = vmul.f32 %v1233_v9, %v851_v6  ;;  %v1235_v12 = vpop.eup %1234  ;;  %vm858_vm3 = vweird.f32 %v1233_v9 }
 0xe3f   :  { %v890_v14 = vmul.f32 %v1235_v12, %v888_v8  ;;  %vm859_vm5 = vmor %vm857_vm4, %vm858_vm3  ;;  %vm895_vm7 = vweird.f32 %v1235_v12  ;;  %vm137_vm3 = vcmask 123904   ;;  %vm144_vm4 = vcmask 255104  }
 0xe40   :  { %v854_v11 = vsub.f32 1.0, %v853_v10  ;;  %vm896_vm10 = vmor %vm894_vm9, %vm895_vm7 }
 0xe41   :  { %v891_v16 = vsub.f32 1.0, %v890_v14 }
 0xe42   :  { %v855_v13 = vmul.f32 %v1233_v9, %v854_v11 }
 0xe43   :  { %v892_v20 = vmul.f32 %v1235_v12, %v891_v16 }
 0xe44   :  { %v856_v15 = vadd.f32 %v1233_v9, %v855_v13 }
 0xe45   :  { %v893_v25 = vadd.f32 %v1235_v12, %v892_v20 }
 0xe46   :  { %v860_v19 = vsel %vm859_vm5, %v1233_v9, %v856_v15 }
 0xe47   :  { %v865_v23 = vsel %vm862_vm6, %v864_v21, %v860_v19  ;;  %v897_v28 = vsel %vm896_vm10, %v1235_v12, %v893_v25 }
 0xe48   :  { %v902_v31 = vsel %vm899_vm11, %v901_v29, %v897_v28  ;;  %v868_v36 = vmul.f32 %v865_v23, %v1487_v34 }
 0xe49   :  { %v905_v40 = vmul.f32 %v902_v31, %v1491_v42 }
 0xe9e   :  { %v871_v22 = vpop.permute.xlu0 %870 }
 0xe9f   :  { %v873_v24 = vmul.f32 %v871_v22, %v865_v23 }
 0xea1   :  { %875 = vrot.lane.b32.xlu2 %v873_v24, %s1258_s26 }
 0xea6   :  { %v908_v30 = vpop.permute.xlu1 %907 }
 0xea7   :  { %v910_v32 = vmul.f32 %v908_v30, %v902_v31 }
 0xea9   :  { %912 = vrot.lane.b32.xlu0 %v910_v32, %s1258_s26 }
 0xefb   :  { %v876_v37 = vpop.permute.xlu2 %875 }
 0xefc   :  { %v1519_v41 = vadd.f32 %v876_v37, %v868_v36 }
 0xefe   :  { %1236 = vtanh.f32 %v1519_v41 }
 0xf04   :  { %v1237_v45 = vpop.eup %1236 }
 0xf05   :  { %881 = vrot.lane.b32.xlu1 %v1237_v45, %s1259_s27 }
 0xf1b   :  { %v913_v44 = vpop.permute.xlu0 %912 }
 0xf1c   :  { %v1524_v38 = vadd.f32 %v913_v44, %v905_v40 }
 0xf1e   :  { %1238 = vtanh.f32 %v1524_v38 }
 0xf24   :  { %v1239_v51 = vpop.eup %1238 }
 0xf25   :  { %918 = vrot.lane.b32.xlu2 %v1239_v51, %s1259_s27 }
 0xf77   :  { %v882_v52 = vpop.permute.xlu1 %881 }
 0xf78   :  { %v1528_v34 = vmul.f32 %v882_v52, %v865_v23 }
 0xf7a   :  { %v934_v54 = vpack.c.bf16 %v1528_v34, %v1528_v34 }
 0xf7c   :  { %936 = vrot.lane.b32.xlu0 %v934_v54, %s1260_s28 }
 0xf7f   :  { %v919_v55 = vpop.permute.xlu2 %918 }
 0xf80   :  { %v1533_v57 = vmul.f32 %v919_v55, %v902_v31 }
 0xf82   :  { %v956_v42 = vpack.c.bf16 %v1533_v57, %v1533_v57 }
 0xf84   :  { %958 = vrot.lane.b32.xlu1 %v956_v42, %s1260_s28 }
 0xfee   :  { %v937_v58 = vpop.permute.xlu0 %936 }
 0xfef   :  { %1118 = vmatmul.msk.bf16.vlgmr.msrb.gmra.mxu2 %vm25_vm8, %v937_v58 }
 0xff6   :  { %v959_v60 = vpop.permute.xlu1 %958 }
 0xff7   :  { %1119 = vmatmul.msk.bf16.vlgmr.msrb.gmra.mxu3 %vm25_vm8, %v959_v60 }
0x1072   :  { %v950_v62 = vpop.f32.mrf.mxu2 }
0x1073   :  { %v954_v63 = vadd.f32 %v1117_v61, %v950_v62 }
0x1075   :  { %1240 = vtanh.f32 %v954_v63  ;;  %v1120_v7 = vmul.f32 -1.442695, %v954_v63 }
0x107a   :  { %v952_v0 = vpop.f32.mrf.mxu2  ;;  %v972_v5 = vpop.f32.mrf.mxu3 }
0x107b   :  { %v1241_v1 = vpop.eup %1240  ;;  %v976_v2 = vadd.f32 %v972_v5, %v955_v3 }
0x107c   :  { %999 = vrot.lane.b32.xlu2 %v1241_v1, %s1257_s25 }
0x107d   :  { %1242 = vtanh.f32 %v976_v2  ;;  %v1121_v13 = vmul.f32 -1.442695, %v976_v2 }
0x107e   :  { %1244 = vpow2.f32 %v1120_v7 }
0x1082   :  { %v974_v4 = vpop.f32.mrf.mxu3 }
0x1083   :  { %v1243_v6 = vpop.eup %1242 }
0x1084   :  { %1036 = vrot.lane.b32.xlu0 %v1243_v6, %s1257_s25  ;;  %v1245_v8 = vpop.eup %1244 }
0x1085   :  { %v980_v9 = vadd.f32 1.0, %v1245_v8 }
0x1087   :  { %1246 = vrcp.f32 %v980_v9  ;;  %v992_v16 = vand.u32 2147483648, %v980_v9  ;;  %vm986_vm12 = vweird.f32 %v980_v9  ;;  %v990_v17 = vand.u32 2147483647, %v980_v9 }
0x1088   :  { %1248 = vpow2.f32 %v1121_v13 }
0x1089   :  { %v993_v20 = vor.u32 1.1754944e-38, %v992_v16  ;;  %vm991_vm14 = vcmp.eq.f32.partialorder %v990_v17, 8.507059e+37 }
0x108d   :  { %v1247_v10 = vpop.eup %1246 }
0x108e   :  { %v982_v11 = vmul.f32 %v1247_v10, %v980_v9  ;;  %vm987_vm8 = vweird.f32 %v1247_v10  ;;  %v1249_v18 = vpop.eup %1248 }
0x108f   :  { %vm988_vm13 = vmor %vm986_vm12, %vm987_vm8  ;;  %v1017_v21 = vadd.f32 1.0, %v1249_v18 }
0x1090   :  { %v983_v12 = vsub.f32 1.0, %v982_v11 }
0x1091   :  { %1250 = vrcp.f32 %v1017_v21  ;;  %v1029_v30 = vand.u32 2147483648, %v1017_v21  ;;  %vm1023_vm0 = vweird.f32 %v1017_v21  ;;  %v1027_v31 = vand.u32 2147483647, %v1017_v21 }
0x1092   :  { %v984_v14 = vmul.f32 %v1247_v10, %v983_v12 }
0x1093   :  { %v1030_v36 = vor.u32 1.1754944e-38, %v1029_v30  ;;  %vm1028_vm2 = vcmp.eq.f32.partialorder %v1027_v31, 8.507059e+37 }
0x1094   :  { %v985_v15 = vadd.f32 %v1247_v10, %v984_v14 }
0x1096   :  { %v989_v19 = vsel %vm988_vm13, %v1247_v10, %v985_v15 }
0x1097   :  { %v994_v22 = vsel %vm991_vm14, %v993_v20, %v989_v19  ;;  %v1251_v25 = vpop.eup %1250 }
0x1098   :  { %v1019_v26 = vmul.f32 %v1251_v25, %v1017_v21  ;;  %vm1024_vm15 = vweird.f32 %v1251_v25  ;;  %v997_v44 = vmul.f32 %v994_v22, %v1519_v41 }
0x1099   :  { %vm1025_vm1 = vmor %vm1023_vm0, %vm1024_vm15 }
0x109a   :  { %v1020_v27 = vsub.f32 1.0, %v1019_v26 }
0x109c   :  { %v1021_v28 = vmul.f32 %v1251_v25, %v1020_v27 }
0x109e   :  { %v1022_v29 = vadd.f32 %v1251_v25, %v1021_v28 }
0x10a0   :  { %v1026_v32 = vsel %vm1025_vm1, %v1251_v25, %v1022_v29 }
0x10a1   :  { %v1031_v45 = vsel %vm1028_vm2, %v1030_v36, %v1026_v32 }
0x10a2   :  { %v1034_v54 = vmul.f32 %v1031_v45, %v1524_v38 }
0x10d6   :  { %v1000_v23 = vpop.permute.xlu2 %999 }
0x10d7   :  { %v1002_v24 = vmul.f32 %v1000_v23, %v994_v22 }
0x10d9   :  { %1004 = vrot.lane.b32.xlu1 %v1002_v24, %s1258_s26 }
0x10f6   :  { %v1037_v37 = vpop.permute.xlu0 %1036 }
0x10f7   :  { %v1039_v40 = vmul.f32 %v1037_v37, %v1031_v45 }
0x10f9   :  { %1041 = vrot.lane.b32.xlu2 %v1039_v40, %s1258_s26 }
0x1101   :  { %134 = vrot.lane.b32.xlu2 %v1330_v56, %s1260_s28 }
0x1109   :  { %273 = vrot.lane.b32.xlu2 %v1369_v53, %s1257_s25 }
0x1111   :  { %531 = vrot.lane.b32.xlu2 %v1432_v39, %s1260_s28 }
0x1119   :  { %668 = vrot.lane.b32.xlu2 %v1469_v46, %s1257_s25 }
0x1121   :  { %923 = vrot.lane.b32.xlu2 %v1528_v34, %s1260_s28 }
0x114b   :  { %v1005_v51 = vpop.permute.xlu1 %1004 }
0x114c   :  { %v1007_v52 = vadd.f32 %v1005_v51, %v997_v44 }
0x114e   :  { %1252 = vtanh.f32 %v1007_v52 }
0x1153   :  { %v1042_v56 = vpop.permute.xlu2 %1041 }
0x1154   :  { %v1253_v55 = vpop.eup %1252  ;;  %v1044_v42 = vadd.f32 %v1042_v56, %v1034_v54 }
0x1155   :  { %1010 = vrot.lane.b32.xlu0 %v1253_v55, %s1259_s27 }
0x1156   :  { %1254 = vtanh.f32 %v1044_v42 }
0x115b   :  { %v135_v53 = vpop.permute.xlu2 %134 }
0x115c   :  { %v1255_v39 = vpop.eup %1254  ;;  %138 = vst.msk [vmem:[%s1652_s4] sm:$0x3] %vm137_vm3, %v135_v53 }
0x115d   :  { %140 = vrot.lane.b32.xlu0 %v1335_v59, %s1257_s25  ;;  %1047 = vrot.lane.b32.xlu1 %v1255_v39, %s1259_s27 }
0x1163   :  { %v274_v46 = vpop.permute.xlu2 %273 }
0x1164   :  { %1076 = vst.msk [vmem:[%s1652_s4 + $0xc] sm:$0x3] %vm144_vm4, %v274_v46 }
0x1165   :  { %399 = vrot.lane.b32.xlu0 %v1398_v43, %s1260_s28  ;;  %267 = vrot.lane.b32.xlu1 %v1364_v49, %s1260_s28 }
0x116b   :  { %v532_v41 = vpop.permute.xlu2 %531 }
0x116c   :  { %1091 = vst.msk [vmem:[%s1652_s4 + $0x6] sm:$0x3] %vm137_vm3, %v532_v41 }
0x116d   :  { %537 = vrot.lane.b32.xlu0 %v1437_v48, %s1257_s25  ;;  %405 = vrot.lane.b32.xlu1 %v1403_v50, %s1257_s25 }
0x1173   :  { %v669_v59 = vpop.permute.xlu2 %668 }
0x1174   :  { %1100 = vst.msk [vmem:[%s1652_s4 + $0x6] sm:$0x3] %vm144_vm4, %v669_v59 }
0x1175   :  { %793 = vrot.lane.b32.xlu0 %v1496_v33, %s1260_s28  ;;  %663 = vrot.lane.b32.xlu1 %v1464_v35, %s1260_s28 }
0x117b   :  { %v924_v49 = vpop.permute.xlu2 %923 }
0x117c   :  { %1115 = vst.msk [vmem:[%s1652_s4 + $0xc] sm:$0x3] %vm137_vm3, %v924_v49 }
0x117d   :  { %928 = vrot.lane.b32.xlu0 %v1533_v57, %s1257_s25  ;;  %798 = vrot.lane.b32.xlu1 %v1501_v47, %s1257_s25 }
0x11c7   :  { %v1011_v43 = vpop.permute.xlu0 %1010 }
0x11c8   :  { %v1013_v50 = vmul.f32 %v1011_v43, %v994_v22 }
0x11ca   :  { %1052 = vrot.lane.b32.xlu1 %v1013_v50, %s1260_s28 }
0x11cf   :  { %v141_v48 = vpop.permute.xlu0 %140  ;;  %v1048_v33 = vpop.permute.xlu1 %1047 }
0x11d0   :  { %1068 = vst.msk [vmem:[%s1652_s4 + $0xe] sm:$0x3] %vm144_vm4, %v141_v48  ;;  %v1050_v35 = vmul.f32 %v1048_v33, %v1031_v45 }
0x11d2   :  { %1057 = vrot.lane.b32.xlu2 %v1050_v35, %s1257_s25 }
0x11d7   :  { %v400_v38 = vpop.permute.xlu0 %399  ;;  %v268_v34 = vpop.permute.xlu1 %267 }
0x11d8   :  { %1083 = vst.msk [vmem:[%s1652_s4 + $0x4] sm:$0x3] %vm137_vm3, %v400_v38 }
0x11d9   :  { %1075 = vst.msk [vmem:[%s1652_s4 + $0x2] sm:$0x3] %vm137_vm3, %v268_v34 }
0x11df   :  { %v538_v47 = vpop.permute.xlu0 %537  ;;  %v406_v57 = vpop.permute.xlu1 %405 }
0x11e0   :  { %1092 = vst.msk [vmem:[%s1652_s4 + $0x8] sm:$0x3] %vm144_vm4, %v538_v47 }
0x11e1   :  { %1084 = vst.msk [vmem:[%s1652_s4 + $0xa] sm:$0x3] %vm144_vm4, %v406_v57 }
0x11e7   :  { %v794_v58 = vpop.permute.xlu0 %793  ;;  %v664_v60 = vpop.permute.xlu1 %663 }
0x11e8   :  { %1107 = vst.msk [vmem:[%s1652_s4 + $0xa] sm:$0x3] %vm137_vm3, %v794_v58 }
0x11e9   :  { %1099 = vst.msk [vmem:[%s1652_s4 + $0x8] sm:$0x3] %vm137_vm3, %v664_v60 }
0x11ef   :  { %v929_v61 = vpop.permute.xlu0 %928  ;;  %v799_v62 = vpop.permute.xlu1 %798 }
0x11f0   :  { %1116 = vst.msk [vmem:[%s1652_s4 + $0x2] sm:$0x3] %vm144_vm4, %v929_v61 }
0x11f1   :  { %1108 = vst.msk [vmem:[%s1652_s4 + $0x4] sm:$0x3] %vm144_vm4, %v799_v62 }
0x122c   :  { %v1058_v63 = vpop.permute.xlu2 %1057 }
0x122d   :  { %1060 = vst.msk [vmem:[%s1652_s4] sm:$0x3] %vm144_vm4, %v1058_v63 }
0x123c   :  { %v1053_v3 = vpop.permute.xlu1 %1052 }
0x123d   :  { %1122 = vst.msk [vmem:[%s1652_s4 + $0xe] sm:$0x3] %vm137_vm3, %v1053_v3 }

</bundles_post_ra>
